<compile_context>
chip_gen: v5e
topology: v5e:2x2
jax: 0.10.0
libtpu: 0.0.40
codegen_flags: <defaults>
</compile_context>

<pallas_src>
import functools

import jax
import jax.numpy as jnp
import numpy as np
from jax.experimental import pallas as pl
from jax.experimental.pallas import tpu as pltpu


def _conv3x3_bias_relu(x, w_ref, b_ref, m_ref, offs):
    """One conv3x3(padding=1)+bias+ReLU on a flat (Cin, lanes) slab.

    x:      (Cin, lanes) f32 value, lanes = NB*H*W (lane-dense)
    w_ref:  (9, Cout, Cin) per-tap weight matrices (tap order = dy outer, dx inner)
    b_ref:  (Cout, 1) bias
    m_ref:  (9, 1, lanes) border masks (0 where the shifted tap reads out of image)
    offs:   static tuple of the 9 flat offsets dy*W + dx
    returns (Cout, lanes) f32
    """
    lanes = x.shape[-1]
    # Center tap (offs[4] == 0): no roll, no mask; seeds the accumulator.
    acc = jnp.dot(w_ref[4], x, preferred_element_type=jnp.float32)
    for t, off in enumerate(offs):
        if off == 0:
            continue
        # shifted[p] = x[(p + off) mod lanes]; wrap/halo killed by the mask.
        xs = pltpu.roll(x, shift=(-off) % lanes, axis=1)
        xs = xs * m_ref[t]  # (1, lanes) broadcasts over the (few) input channels
        acc = acc + jnp.dot(w_ref[t], xs, preferred_element_type=jnp.float32)
    return jnp.maximum(acc + b_ref[...], 0.0)


def _double_conv_kernel(x_ref, w1_ref, b1_ref, w2_ref, b2_ref, m_ref, o_ref,
                        *, offs):
    # x_ref: (Cin, lanes)  block of NB images, channels on sublanes
    # o_ref: (C1,  lanes)
    x = x_ref[...].astype(jnp.float32)
    h = _conv3x3_bias_relu(x, w1_ref, b1_ref, m_ref, offs)   # stays in VMEM/vregs
    y = _conv3x3_bias_relu(h, w2_ref, b2_ref, m_ref, offs)
    o_ref[...] = y.astype(o_ref.dtype)


def _halo_masks(H, W, NB):
    """(9, 1, NB*H*W) f32 masks: 1 where tap (dy,dx) reads a valid pixel."""
    p = np.arange(H * W)
    hh, ww = p // W, p % W
    rows = []
    for dy in (-1, 0, 1):
        for dx in (-1, 0, 1):
            ok = ((hh + dy >= 0) & (hh + dy < H) &
                  (ww + dx >= 0) & (ww + dx < W))
            rows.append(ok.astype(np.float32))
    m = np.stack(rows, axis=0)          # (9, HW), pattern is identical per image
    m = np.tile(m, (1, NB))             # (9, NB*HW)
    return jnp.asarray(m.reshape(9, 1, NB * H * W))


def double_conv(x_nchw, w1, b1, w2, b2, *, vmem_budget_bytes=8 << 20):
    """DoubleConv.forward: relu(conv2(relu(conv1(x)))).  NCHW in / NCHW out."""
    N, Cin, H, W = x_nchw.shape
    C1 = w1.shape[0]
    HW = H * W

    # Images per grid step: largest divisor of N whose f32 footprint
    # (x + out blocks double-buffered, intermediate, accumulator) fits budget.
    per_img = 4 * HW * (2 * Cin + 4 * C1)
    nb_cap = max(1, vmem_budget_bytes // per_img)
    NB = max(d for d in range(1, N + 1) if N % d == 0 and d <= nb_cap)
    lanes = NB * HW

    # Lane-dense layout: channels on sublanes, (batch, h, w) flattened on lanes.
    x_flat = jnp.transpose(x_nchw, (1, 0, 2, 3)).reshape(Cin, N * HW)

    # (Cout, Cin, 3, 3) -> (3, 3, Cout, Cin) -> (9, Cout, Cin); tap order
    # matches the (dy, dx) loop in the kernel (dy = ky-1, dx = kx-1).
    w1_taps = jnp.transpose(w1, (2, 3, 0, 1)).reshape(9, C1, Cin).astype(jnp.float32)
    w2_taps = jnp.transpose(w2, (2, 3, 0, 1)).reshape(9, C1, C1).astype(jnp.float32)
    b1c = b1.reshape(C1, 1).astype(jnp.float32)
    b2c = b2.reshape(C1, 1).astype(jnp.float32)
    masks = _halo_masks(H, W, NB)

    offs = tuple(dy * W + dx for dy in (-1, 0, 1) for dx in (-1, 0, 1))
    kernel = functools.partial(_double_conv_kernel, offs=offs)

    out_flat = pl.pallas_call(
        kernel,
        out_shape=jax.ShapeDtypeStruct((C1, N * HW), x_nchw.dtype),
        grid=(N // NB,),
        in_specs=[
            pl.BlockSpec((Cin, lanes), lambda n: (0, n)),      # activations
            pl.BlockSpec((9, C1, Cin), lambda n: (0, 0, 0)),   # conv1 taps (resident)
            pl.BlockSpec((C1, 1), lambda n: (0, 0)),           # conv1 bias  (resident)
            pl.BlockSpec((9, C1, C1), lambda n: (0, 0, 0)),    # conv2 taps (resident)
            pl.BlockSpec((C1, 1), lambda n: (0, 0)),           # conv2 bias  (resident)
            pl.BlockSpec((9, 1, lanes), lambda n: (0, 0, 0)),  # halo masks (resident)
        ],
        out_specs=pl.BlockSpec((C1, lanes), lambda n: (0, n)),
        compiler_params=pltpu.CompilerParams(
            dimension_semantics=("parallel",)),
    )(x_flat, w1_taps, b1c, w2_taps, b2c, masks)

    return jnp.transpose(out_flat.reshape(C1, N, H, W), (1, 0, 2, 3))


def _reference_double_conv(x_nchw, w1, b1, w2, b2):
    """Pure-JAX reference using lax.conv, for correctness checking."""
    def conv(x, w, b):
        y = jax.lax.conv_general_dilated(
            x, w, window_strides=(1, 1), padding=((1, 1), (1, 1)),
            dimension_numbers=("NCHW", "OIHW", "NCHW"))
        return jnp.maximum(y + b[None, :, None, None], 0.0)
    return conv(conv(x_nchw, w1, b1), w2, b2)


if __name__ == "__main__":
    # Small shapes consistent with the module: N=2, Cin=4, Cout=8, H=W=16.
    N, CIN, COUT, H, W = 2, 4, 8, 16, 16
    key = jax.random.PRNGKey(0)
    kx, kw1, kb1, kw2, kb2 = jax.random.split(key, 5)

    x = jax.random.normal(kx, (N, CIN, H, W), dtype=jnp.float32)
    w1 = jax.random.normal(kw1, (COUT, CIN, 3, 3), dtype=jnp.float32) * 0.1
    b1 = jax.random.normal(kb1, (COUT,), dtype=jnp.float32) * 0.1
    w2 = jax.random.normal(kw2, (COUT, COUT, 3, 3), dtype=jnp.float32) * 0.1
    b2 = jax.random.normal(kb2, (COUT,), dtype=jnp.float32) * 0.1

    fn = jax.jit(double_conv)
    out = jax.block_until_ready(fn(x, w1, b1, w2, b2))

    ref = _reference_double_conv(x, w1, b1, w2, b2)
    assert out.shape == (N, COUT, H, W), out.shape
    assert jnp.allclose(out, ref, atol=1e-4, rtol=1e-4), \
        float(jnp.max(jnp.abs(out - ref)))

    print("KERNEL_OK")
</pallas_src>

<mosaic_0001>
module attributes {stable_mosaic.version = 11 : i64} {
  func.func @_double_conv_kernel(%arg0: i32, %arg1: memref<4x512xf32, #tpu.memory_space<vmem>>, %arg2: memref<9x8x4xf32, #tpu.memory_space<vmem>>, %arg3: memref<8x1xf32, #tpu.memory_space<vmem>>, %arg4: memref<9x8x8xf32, #tpu.memory_space<vmem>>, %arg5: memref<8x1xf32, #tpu.memory_space<vmem>>, %arg6: memref<9x1x512xf32, #tpu.memory_space<vmem>>, %arg7: memref<8x512xf32, #tpu.memory_space<vmem>>) attributes {dimension_semantics = [#tpu.dimension_semantics<parallel>], iteration_bounds = array<i64: 1>, scalar_prefetch = 0 : i64, scratch_operands = 0 : i64, tpu.core_type = #tpu.core_type<tc>, window_params = [{transform_indices = @transform_0, window_bounds = array<i64: 4, 512>}, {pipeline_mode = #tpu.pipeline_mode<synchronous>, transform_indices = @transform_1, window_bounds = array<i64: 9, 8, 4>}, {pipeline_mode = #tpu.pipeline_mode<synchronous>, transform_indices = @transform_2, window_bounds = array<i64: 8, 1>}, {pipeline_mode = #tpu.pipeline_mode<synchronous>, transform_indices = @transform_3, window_bounds = array<i64: 9, 8, 8>}, {pipeline_mode = #tpu.pipeline_mode<synchronous>, transform_indices = @transform_4, window_bounds = array<i64: 8, 1>}, {pipeline_mode = #tpu.pipeline_mode<synchronous>, transform_indices = @transform_5, window_bounds = array<i64: 9, 1, 512>}, {transform_indices = @transform_6, window_bounds = array<i64: 8, 512>}]} {
    %c0 = arith.constant 0 : index
    %c0_0 = arith.constant 0 : index
    %0 = vector.load %arg1[%c0, %c0_0] : memref<4x512xf32, #tpu.memory_space<vmem>>, vector<4x512xf32>
    %c4 = arith.constant 4 : index
    %c0_1 = arith.constant 0 : index
    %c0_2 = arith.constant 0 : index
    %1 = vector.load %arg2[%c4, %c0_1, %c0_2] : memref<9x8x4xf32, #tpu.memory_space<vmem>>, vector<1x8x4xf32>
    %2 = vector.shape_cast %1 : vector<1x8x4xf32> to vector<8x4xf32>
    %cst = arith.constant dense<0.000000e+00> : vector<8x512xf32>
    %3 = tpu.matmul %2, %0, %cst {dimension_numbers = #tpu.dot_dimension_numbers<[1], [0], [0], [1], [0, 0, 1, 1], [], []>} : vector<8x4xf32>, vector<4x512xf32>, vector<8x512xf32> -> vector<8x512xf32>
    %c17_i32 = arith.constant 17 : i32
    %4 = tpu.dynamic_rotate %0 by %c17_i32 dim 1 : vector<4x512xf32>, i32 -> vector<4x512xf32>
    %c0_3 = arith.constant 0 : index
    %c0_4 = arith.constant 0 : index
    %c0_5 = arith.constant 0 : index
    %5 = vector.load %arg6[%c0_3, %c0_4, %c0_5] : memref<9x1x512xf32, #tpu.memory_space<vmem>>, vector<1x1x512xf32>
    %6 = vector.shape_cast %5 : vector<1x1x512xf32> to vector<1x512xf32>
    %7 = vector.broadcast %6 : vector<1x512xf32> to vector<4x512xf32>
    %8 = arith.mulf %4, %7 : vector<4x512xf32>
    %c0_6 = arith.constant 0 : index
    %c0_7 = arith.constant 0 : index
    %c0_8 = arith.constant 0 : index
    %9 = vector.load %arg2[%c0_6, %c0_7, %c0_8] : memref<9x8x4xf32, #tpu.memory_space<vmem>>, vector<1x8x4xf32>
    %10 = vector.shape_cast %9 : vector<1x8x4xf32> to vector<8x4xf32>
    %cst_9 = arith.constant dense<0.000000e+00> : vector<8x512xf32>
    %11 = tpu.matmul %10, %8, %cst_9 {dimension_numbers = #tpu.dot_dimension_numbers<[1], [0], [0], [1], [0, 0, 1, 1], [], []>} : vector<8x4xf32>, vector<4x512xf32>, vector<8x512xf32> -> vector<8x512xf32>
    %12 = arith.addf %3, %11 : vector<8x512xf32>
    %c16_i32 = arith.constant 16 : i32
    %13 = tpu.dynamic_rotate %0 by %c16_i32 dim 1 : vector<4x512xf32>, i32 -> vector<4x512xf32>
    %c1 = arith.constant 1 : index
    %c0_10 = arith.constant 0 : index
    %c0_11 = arith.constant 0 : index
    %14 = vector.load %arg6[%c1, %c0_10, %c0_11] : memref<9x1x512xf32, #tpu.memory_space<vmem>>, vector<1x1x512xf32>
    %15 = vector.shape_cast %14 : vector<1x1x512xf32> to vector<1x512xf32>
    %16 = vector.broadcast %15 : vector<1x512xf32> to vector<4x512xf32>
    %17 = arith.mulf %13, %16 : vector<4x512xf32>
    %c1_12 = arith.constant 1 : index
    %c0_13 = arith.constant 0 : index
    %c0_14 = arith.constant 0 : index
    %18 = vector.load %arg2[%c1_12, %c0_13, %c0_14] : memref<9x8x4xf32, #tpu.memory_space<vmem>>, vector<1x8x4xf32>
    %19 = vector.shape_cast %18 : vector<1x8x4xf32> to vector<8x4xf32>
    %cst_15 = arith.constant dense<0.000000e+00> : vector<8x512xf32>
    %20 = tpu.matmul %19, %17, %cst_15 {dimension_numbers = #tpu.dot_dimension_numbers<[1], [0], [0], [1], [0, 0, 1, 1], [], []>} : vector<8x4xf32>, vector<4x512xf32>, vector<8x512xf32> -> vector<8x512xf32>
    %21 = arith.addf %12, %20 : vector<8x512xf32>
    %c15_i32 = arith.constant 15 : i32
    %22 = tpu.dynamic_rotate %0 by %c15_i32 dim 1 : vector<4x512xf32>, i32 -> vector<4x512xf32>
    %c2 = arith.constant 2 : index
    %c0_16 = arith.constant 0 : index
    %c0_17 = arith.constant 0 : index
    %23 = vector.load %arg6[%c2, %c0_16, %c0_17] : memref<9x1x512xf32, #tpu.memory_space<vmem>>, vector<1x1x512xf32>
    %24 = vector.shape_cast %23 : vector<1x1x512xf32> to vector<1x512xf32>
    %25 = vector.broadcast %24 : vector<1x512xf32> to vector<4x512xf32>
    %26 = arith.mulf %22, %25 : vector<4x512xf32>
    %c2_18 = arith.constant 2 : index
    %c0_19 = arith.constant 0 : index
    %c0_20 = arith.constant 0 : index
    %27 = vector.load %arg2[%c2_18, %c0_19, %c0_20] : memref<9x8x4xf32, #tpu.memory_space<vmem>>, vector<1x8x4xf32>
    %28 = vector.shape_cast %27 : vector<1x8x4xf32> to vector<8x4xf32>
    %cst_21 = arith.constant dense<0.000000e+00> : vector<8x512xf32>
    %29 = tpu.matmul %28, %26, %cst_21 {dimension_numbers = #tpu.dot_dimension_numbers<[1], [0], [0], [1], [0, 0, 1, 1], [], []>} : vector<8x4xf32>, vector<4x512xf32>, vector<8x512xf32> -> vector<8x512xf32>
    %30 = arith.addf %21, %29 : vector<8x512xf32>
    %c1_i32 = arith.constant 1 : i32
    %31 = tpu.dynamic_rotate %0 by %c1_i32 dim 1 : vector<4x512xf32>, i32 -> vector<4x512xf32>
    %c3 = arith.constant 3 : index
    %c0_22 = arith.constant 0 : index
    %c0_23 = arith.constant 0 : index
    %32 = vector.load %arg6[%c3, %c0_22, %c0_23] : memref<9x1x512xf32, #tpu.memory_space<vmem>>, vector<1x1x512xf32>
    %33 = vector.shape_cast %32 : vector<1x1x512xf32> to vector<1x512xf32>
    %34 = vector.broadcast %33 : vector<1x512xf32> to vector<4x512xf32>
    %35 = arith.mulf %31, %34 : vector<4x512xf32>
    %c3_24 = arith.constant 3 : index
    %c0_25 = arith.constant 0 : index
    %c0_26 = arith.constant 0 : index
    %36 = vector.load %arg2[%c3_24, %c0_25, %c0_26] : memref<9x8x4xf32, #tpu.memory_space<vmem>>, vector<1x8x4xf32>
    %37 = vector.shape_cast %36 : vector<1x8x4xf32> to vector<8x4xf32>
    %cst_27 = arith.constant dense<0.000000e+00> : vector<8x512xf32>
    %38 = tpu.matmul %37, %35, %cst_27 {dimension_numbers = #tpu.dot_dimension_numbers<[1], [0], [0], [1], [0, 0, 1, 1], [], []>} : vector<8x4xf32>, vector<4x512xf32>, vector<8x512xf32> -> vector<8x512xf32>
    %39 = arith.addf %30, %38 : vector<8x512xf32>
    %c511_i32 = arith.constant 511 : i32
    %40 = tpu.dynamic_rotate %0 by %c511_i32 dim 1 : vector<4x512xf32>, i32 -> vector<4x512xf32>
    %c5 = arith.constant 5 : index
    %c0_28 = arith.constant 0 : index
    %c0_29 = arith.constant 0 : index
    %41 = vector.load %arg6[%c5, %c0_28, %c0_29] : memref<9x1x512xf32, #tpu.memory_space<vmem>>, vector<1x1x512xf32>
    %42 = vector.shape_cast %41 : vector<1x1x512xf32> to vector<1x512xf32>
    %43 = vector.broadcast %42 : vector<1x512xf32> to vector<4x512xf32>
    %44 = arith.mulf %40, %43 : vector<4x512xf32>
    %c5_30 = arith.constant 5 : index
    %c0_31 = arith.constant 0 : index
    %c0_32 = arith.constant 0 : index
    %45 = vector.load %arg2[%c5_30, %c0_31, %c0_32] : memref<9x8x4xf32, #tpu.memory_space<vmem>>, vector<1x8x4xf32>
    %46 = vector.shape_cast %45 : vector<1x8x4xf32> to vector<8x4xf32>
    %cst_33 = arith.constant dense<0.000000e+00> : vector<8x512xf32>
    %47 = tpu.matmul %46, %44, %cst_33 {dimension_numbers = #tpu.dot_dimension_numbers<[1], [0], [0], [1], [0, 0, 1, 1], [], []>} : vector<8x4xf32>, vector<4x512xf32>, vector<8x512xf32> -> vector<8x512xf32>
    %48 = arith.addf %39, %47 : vector<8x512xf32>
    %c497_i32 = arith.constant 497 : i32
    %49 = tpu.dynamic_rotate %0 by %c497_i32 dim 1 : vector<4x512xf32>, i32 -> vector<4x512xf32>
    %c6 = arith.constant 6 : index
    %c0_34 = arith.constant 0 : index
    %c0_35 = arith.constant 0 : index
    %50 = vector.load %arg6[%c6, %c0_34, %c0_35] : memref<9x1x512xf32, #tpu.memory_space<vmem>>, vector<1x1x512xf32>
    %51 = vector.shape_cast %50 : vector<1x1x512xf32> to vector<1x512xf32>
    %52 = vector.broadcast %51 : vector<1x512xf32> to vector<4x512xf32>
    %53 = arith.mulf %49, %52 : vector<4x512xf32>
    %c6_36 = arith.constant 6 : index
    %c0_37 = arith.constant 0 : index
    %c0_38 = arith.constant 0 : index
    %54 = vector.load %arg2[%c6_36, %c0_37, %c0_38] : memref<9x8x4xf32, #tpu.memory_space<vmem>>, vector<1x8x4xf32>
    %55 = vector.shape_cast %54 : vector<1x8x4xf32> to vector<8x4xf32>
    %cst_39 = arith.constant dense<0.000000e+00> : vector<8x512xf32>
    %56 = tpu.matmul %55, %53, %cst_39 {dimension_numbers = #tpu.dot_dimension_numbers<[1], [0], [0], [1], [0, 0, 1, 1], [], []>} : vector<8x4xf32>, vector<4x512xf32>, vector<8x512xf32> -> vector<8x512xf32>
    %57 = arith.addf %48, %56 : vector<8x512xf32>
    %c496_i32 = arith.constant 496 : i32
    %58 = tpu.dynamic_rotate %0 by %c496_i32 dim 1 : vector<4x512xf32>, i32 -> vector<4x512xf32>
    %c7 = arith.constant 7 : index
    %c0_40 = arith.constant 0 : index
    %c0_41 = arith.constant 0 : index
    %59 = vector.load %arg6[%c7, %c0_40, %c0_41] : memref<9x1x512xf32, #tpu.memory_space<vmem>>, vector<1x1x512xf32>
    %60 = vector.shape_cast %59 : vector<1x1x512xf32> to vector<1x512xf32>
    %61 = vector.broadcast %60 : vector<1x512xf32> to vector<4x512xf32>
    %62 = arith.mulf %58, %61 : vector<4x512xf32>
    %c7_42 = arith.constant 7 : index
    %c0_43 = arith.constant 0 : index
    %c0_44 = arith.constant 0 : index
    %63 = vector.load %arg2[%c7_42, %c0_43, %c0_44] : memref<9x8x4xf32, #tpu.memory_space<vmem>>, vector<1x8x4xf32>
    %64 = vector.shape_cast %63 : vector<1x8x4xf32> to vector<8x4xf32>
    %cst_45 = arith.constant dense<0.000000e+00> : vector<8x512xf32>
    %65 = tpu.matmul %64, %62, %cst_45 {dimension_numbers = #tpu.dot_dimension_numbers<[1], [0], [0], [1], [0, 0, 1, 1], [], []>} : vector<8x4xf32>, vector<4x512xf32>, vector<8x512xf32> -> vector<8x512xf32>
    %66 = arith.addf %57, %65 : vector<8x512xf32>
    %c495_i32 = arith.constant 495 : i32
    %67 = tpu.dynamic_rotate %0 by %c495_i32 dim 1 : vector<4x512xf32>, i32 -> vector<4x512xf32>
    %c8 = arith.constant 8 : index
    %c0_46 = arith.constant 0 : index
    %c0_47 = arith.constant 0 : index
    %68 = vector.load %arg6[%c8, %c0_46, %c0_47] : memref<9x1x512xf32, #tpu.memory_space<vmem>>, vector<1x1x512xf32>
    %69 = vector.shape_cast %68 : vector<1x1x512xf32> to vector<1x512xf32>
    %70 = vector.broadcast %69 : vector<1x512xf32> to vector<4x512xf32>
    %71 = arith.mulf %67, %70 : vector<4x512xf32>
    %c8_48 = arith.constant 8 : index
    %c0_49 = arith.constant 0 : index
    %c0_50 = arith.constant 0 : index
    %72 = vector.load %arg2[%c8_48, %c0_49, %c0_50] : memref<9x8x4xf32, #tpu.memory_space<vmem>>, vector<1x8x4xf32>
    %73 = vector.shape_cast %72 : vector<1x8x4xf32> to vector<8x4xf32>
    %cst_51 = arith.constant dense<0.000000e+00> : vector<8x512xf32>
    %74 = tpu.matmul %73, %71, %cst_51 {dimension_numbers = #tpu.dot_dimension_numbers<[1], [0], [0], [1], [0, 0, 1, 1], [], []>} : vector<8x4xf32>, vector<4x512xf32>, vector<8x512xf32> -> vector<8x512xf32>
    %75 = arith.addf %66, %74 : vector<8x512xf32>
    %c0_52 = arith.constant 0 : index
    %c0_53 = arith.constant 0 : index
    %76 = vector.load %arg3[%c0_52, %c0_53] : memref<8x1xf32, #tpu.memory_space<vmem>>, vector<8x1xf32>
    %77 = vector.broadcast %76 : vector<8x1xf32> to vector<8x512xf32>
    %78 = arith.addf %75, %77 : vector<8x512xf32>
    %cst_54 = arith.constant 0.000000e+00 : f32
    %79 = vector.broadcast %cst_54 : f32 to vector<8x512xf32>
    %80 = arith.maximumf %78, %79 : vector<8x512xf32>
    %c4_55 = arith.constant 4 : index
    %c0_56 = arith.constant 0 : index
    %c0_57 = arith.constant 0 : index
    %81 = vector.load %arg4[%c4_55, %c0_56, %c0_57] : memref<9x8x8xf32, #tpu.memory_space<vmem>>, vector<1x8x8xf32>
    %82 = vector.shape_cast %81 : vector<1x8x8xf32> to vector<8x8xf32>
    %cst_58 = arith.constant dense<0.000000e+00> : vector<8x512xf32>
    %83 = tpu.matmul %82, %80, %cst_58 {dimension_numbers = #tpu.dot_dimension_numbers<[1], [0], [0], [1], [0, 0, 1, 1], [], []>} : vector<8x8xf32>, vector<8x512xf32>, vector<8x512xf32> -> vector<8x512xf32>
    %c17_i32_59 = arith.constant 17 : i32
    %84 = tpu.dynamic_rotate %80 by %c17_i32_59 dim 1 : vector<8x512xf32>, i32 -> vector<8x512xf32>
    %c0_60 = arith.constant 0 : index
    %c0_61 = arith.constant 0 : index
    %c0_62 = arith.constant 0 : index
    %85 = vector.load %arg6[%c0_60, %c0_61, %c0_62] : memref<9x1x512xf32, #tpu.memory_space<vmem>>, vector<1x1x512xf32>
    %86 = vector.shape_cast %85 : vector<1x1x512xf32> to vector<1x512xf32>
    %87 = vector.broadcast %86 : vector<1x512xf32> to vector<8x512xf32>
    %88 = arith.mulf %84, %87 : vector<8x512xf32>
    %c0_63 = arith.constant 0 : index
    %c0_64 = arith.constant 0 : index
    %c0_65 = arith.constant 0 : index
    %89 = vector.load %arg4[%c0_63, %c0_64, %c0_65] : memref<9x8x8xf32, #tpu.memory_space<vmem>>, vector<1x8x8xf32>
    %90 = vector.shape_cast %89 : vector<1x8x8xf32> to vector<8x8xf32>
    %cst_66 = arith.constant dense<0.000000e+00> : vector<8x512xf32>
    %91 = tpu.matmul %90, %88, %cst_66 {dimension_numbers = #tpu.dot_dimension_numbers<[1], [0], [0], [1], [0, 0, 1, 1], [], []>} : vector<8x8xf32>, vector<8x512xf32>, vector<8x512xf32> -> vector<8x512xf32>
    %92 = arith.addf %83, %91 : vector<8x512xf32>
    %c16_i32_67 = arith.constant 16 : i32
    %93 = tpu.dynamic_rotate %80 by %c16_i32_67 dim 1 : vector<8x512xf32>, i32 -> vector<8x512xf32>
    %c1_68 = arith.constant 1 : index
    %c0_69 = arith.constant 0 : index
    %c0_70 = arith.constant 0 : index
    %94 = vector.load %arg6[%c1_68, %c0_69, %c0_70] : memref<9x1x512xf32, #tpu.memory_space<vmem>>, vector<1x1x512xf32>
    %95 = vector.shape_cast %94 : vector<1x1x512xf32> to vector<1x512xf32>
    %96 = vector.broadcast %95 : vector<1x512xf32> to vector<8x512xf32>
    %97 = arith.mulf %93, %96 : vector<8x512xf32>
    %c1_71 = arith.constant 1 : index
    %c0_72 = arith.constant 0 : index
    %c0_73 = arith.constant 0 : index
    %98 = vector.load %arg4[%c1_71, %c0_72, %c0_73] : memref<9x8x8xf32, #tpu.memory_space<vmem>>, vector<1x8x8xf32>
    %99 = vector.shape_cast %98 : vector<1x8x8xf32> to vector<8x8xf32>
    %cst_74 = arith.constant dense<0.000000e+00> : vector<8x512xf32>
    %100 = tpu.matmul %99, %97, %cst_74 {dimension_numbers = #tpu.dot_dimension_numbers<[1], [0], [0], [1], [0, 0, 1, 1], [], []>} : vector<8x8xf32>, vector<8x512xf32>, vector<8x512xf32> -> vector<8x512xf32>
    %101 = arith.addf %92, %100 : vector<8x512xf32>
    %c15_i32_75 = arith.constant 15 : i32
    %102 = tpu.dynamic_rotate %80 by %c15_i32_75 dim 1 : vector<8x512xf32>, i32 -> vector<8x512xf32>
    %c2_76 = arith.constant 2 : index
    %c0_77 = arith.constant 0 : index
    %c0_78 = arith.constant 0 : index
    %103 = vector.load %arg6[%c2_76, %c0_77, %c0_78] : memref<9x1x512xf32, #tpu.memory_space<vmem>>, vector<1x1x512xf32>
    %104 = vector.shape_cast %103 : vector<1x1x512xf32> to vector<1x512xf32>
    %105 = vector.broadcast %104 : vector<1x512xf32> to vector<8x512xf32>
    %106 = arith.mulf %102, %105 : vector<8x512xf32>
    %c2_79 = arith.constant 2 : index
    %c0_80 = arith.constant 0 : index
    %c0_81 = arith.constant 0 : index
    %107 = vector.load %arg4[%c2_79, %c0_80, %c0_81] : memref<9x8x8xf32, #tpu.memory_space<vmem>>, vector<1x8x8xf32>
    %108 = vector.shape_cast %107 : vector<1x8x8xf32> to vector<8x8xf32>
    %cst_82 = arith.constant dense<0.000000e+00> : vector<8x512xf32>
    %109 = tpu.matmul %108, %106, %cst_82 {dimension_numbers = #tpu.dot_dimension_numbers<[1], [0], [0], [1], [0, 0, 1, 1], [], []>} : vector<8x8xf32>, vector<8x512xf32>, vector<8x512xf32> -> vector<8x512xf32>
    %110 = arith.addf %101, %109 : vector<8x512xf32>
    %c1_i32_83 = arith.constant 1 : i32
    %111 = tpu.dynamic_rotate %80 by %c1_i32_83 dim 1 : vector<8x512xf32>, i32 -> vector<8x512xf32>
    %c3_84 = arith.constant 3 : index
    %c0_85 = arith.constant 0 : index
    %c0_86 = arith.constant 0 : index
    %112 = vector.load %arg6[%c3_84, %c0_85, %c0_86] : memref<9x1x512xf32, #tpu.memory_space<vmem>>, vector<1x1x512xf32>
    %113 = vector.shape_cast %112 : vector<1x1x512xf32> to vector<1x512xf32>
    %114 = vector.broadcast %113 : vector<1x512xf32> to vector<8x512xf32>
    %115 = arith.mulf %111, %114 : vector<8x512xf32>
    %c3_87 = arith.constant 3 : index
    %c0_88 = arith.constant 0 : index
    %c0_89 = arith.constant 0 : index
    %116 = vector.load %arg4[%c3_87, %c0_88, %c0_89] : memref<9x8x8xf32, #tpu.memory_space<vmem>>, vector<1x8x8xf32>
    %117 = vector.shape_cast %116 : vector<1x8x8xf32> to vector<8x8xf32>
    %cst_90 = arith.constant dense<0.000000e+00> : vector<8x512xf32>
    %118 = tpu.matmul %117, %115, %cst_90 {dimension_numbers = #tpu.dot_dimension_numbers<[1], [0], [0], [1], [0, 0, 1, 1], [], []>} : vector<8x8xf32>, vector<8x512xf32>, vector<8x512xf32> -> vector<8x512xf32>
    %119 = arith.addf %110, %118 : vector<8x512xf32>
    %c511_i32_91 = arith.constant 511 : i32
    %120 = tpu.dynamic_rotate %80 by %c511_i32_91 dim 1 : vector<8x512xf32>, i32 -> vector<8x512xf32>
    %c5_92 = arith.constant 5 : index
    %c0_93 = arith.constant 0 : index
    %c0_94 = arith.constant 0 : index
    %121 = vector.load %arg6[%c5_92, %c0_93, %c0_94] : memref<9x1x512xf32, #tpu.memory_space<vmem>>, vector<1x1x512xf32>
    %122 = vector.shape_cast %121 : vector<1x1x512xf32> to vector<1x512xf32>
    %123 = vector.broadcast %122 : vector<1x512xf32> to vector<8x512xf32>
    %124 = arith.mulf %120, %123 : vector<8x512xf32>
    %c5_95 = arith.constant 5 : index
    %c0_96 = arith.constant 0 : index
    %c0_97 = arith.constant 0 : index
    %125 = vector.load %arg4[%c5_95, %c0_96, %c0_97] : memref<9x8x8xf32, #tpu.memory_space<vmem>>, vector<1x8x8xf32>
    %126 = vector.shape_cast %125 : vector<1x8x8xf32> to vector<8x8xf32>
    %cst_98 = arith.constant dense<0.000000e+00> : vector<8x512xf32>
    %127 = tpu.matmul %126, %124, %cst_98 {dimension_numbers = #tpu.dot_dimension_numbers<[1], [0], [0], [1], [0, 0, 1, 1], [], []>} : vector<8x8xf32>, vector<8x512xf32>, vector<8x512xf32> -> vector<8x512xf32>
    %128 = arith.addf %119, %127 : vector<8x512xf32>
    %c497_i32_99 = arith.constant 497 : i32
    %129 = tpu.dynamic_rotate %80 by %c497_i32_99 dim 1 : vector<8x512xf32>, i32 -> vector<8x512xf32>
    %c6_100 = arith.constant 6 : index
    %c0_101 = arith.constant 0 : index
    %c0_102 = arith.constant 0 : index
    %130 = vector.load %arg6[%c6_100, %c0_101, %c0_102] : memref<9x1x512xf32, #tpu.memory_space<vmem>>, vector<1x1x512xf32>
    %131 = vector.shape_cast %130 : vector<1x1x512xf32> to vector<1x512xf32>
    %132 = vector.broadcast %131 : vector<1x512xf32> to vector<8x512xf32>
    %133 = arith.mulf %129, %132 : vector<8x512xf32>
    %c6_103 = arith.constant 6 : index
    %c0_104 = arith.constant 0 : index
    %c0_105 = arith.constant 0 : index
    %134 = vector.load %arg4[%c6_103, %c0_104, %c0_105] : memref<9x8x8xf32, #tpu.memory_space<vmem>>, vector<1x8x8xf32>
    %135 = vector.shape_cast %134 : vector<1x8x8xf32> to vector<8x8xf32>
    %cst_106 = arith.constant dense<0.000000e+00> : vector<8x512xf32>
    %136 = tpu.matmul %135, %133, %cst_106 {dimension_numbers = #tpu.dot_dimension_numbers<[1], [0], [0], [1], [0, 0, 1, 1], [], []>} : vector<8x8xf32>, vector<8x512xf32>, vector<8x512xf32> -> vector<8x512xf32>
    %137 = arith.addf %128, %136 : vector<8x512xf32>
    %c496_i32_107 = arith.constant 496 : i32
    %138 = tpu.dynamic_rotate %80 by %c496_i32_107 dim 1 : vector<8x512xf32>, i32 -> vector<8x512xf32>
    %c7_108 = arith.constant 7 : index
    %c0_109 = arith.constant 0 : index
    %c0_110 = arith.constant 0 : index
    %139 = vector.load %arg6[%c7_108, %c0_109, %c0_110] : memref<9x1x512xf32, #tpu.memory_space<vmem>>, vector<1x1x512xf32>
    %140 = vector.shape_cast %139 : vector<1x1x512xf32> to vector<1x512xf32>
    %141 = vector.broadcast %140 : vector<1x512xf32> to vector<8x512xf32>
    %142 = arith.mulf %138, %141 : vector<8x512xf32>
    %c7_111 = arith.constant 7 : index
    %c0_112 = arith.constant 0 : index
    %c0_113 = arith.constant 0 : index
    %143 = vector.load %arg4[%c7_111, %c0_112, %c0_113] : memref<9x8x8xf32, #tpu.memory_space<vmem>>, vector<1x8x8xf32>
    %144 = vector.shape_cast %143 : vector<1x8x8xf32> to vector<8x8xf32>
    %cst_114 = arith.constant dense<0.000000e+00> : vector<8x512xf32>
    %145 = tpu.matmul %144, %142, %cst_114 {dimension_numbers = #tpu.dot_dimension_numbers<[1], [0], [0], [1], [0, 0, 1, 1], [], []>} : vector<8x8xf32>, vector<8x512xf32>, vector<8x512xf32> -> vector<8x512xf32>
    %146 = arith.addf %137, %145 : vector<8x512xf32>
    %c495_i32_115 = arith.constant 495 : i32
    %147 = tpu.dynamic_rotate %80 by %c495_i32_115 dim 1 : vector<8x512xf32>, i32 -> vector<8x512xf32>
    %c8_116 = arith.constant 8 : index
    %c0_117 = arith.constant 0 : index
    %c0_118 = arith.constant 0 : index
    %148 = vector.load %arg6[%c8_116, %c0_117, %c0_118] : memref<9x1x512xf32, #tpu.memory_space<vmem>>, vector<1x1x512xf32>
    %149 = vector.shape_cast %148 : vector<1x1x512xf32> to vector<1x512xf32>
    %150 = vector.broadcast %149 : vector<1x512xf32> to vector<8x512xf32>
    %151 = arith.mulf %147, %150 : vector<8x512xf32>
    %c8_119 = arith.constant 8 : index
    %c0_120 = arith.constant 0 : index
    %c0_121 = arith.constant 0 : index
    %152 = vector.load %arg4[%c8_119, %c0_120, %c0_121] : memref<9x8x8xf32, #tpu.memory_space<vmem>>, vector<1x8x8xf32>
    %153 = vector.shape_cast %152 : vector<1x8x8xf32> to vector<8x8xf32>
    %cst_122 = arith.constant dense<0.000000e+00> : vector<8x512xf32>
    %154 = tpu.matmul %153, %151, %cst_122 {dimension_numbers = #tpu.dot_dimension_numbers<[1], [0], [0], [1], [0, 0, 1, 1], [], []>} : vector<8x8xf32>, vector<8x512xf32>, vector<8x512xf32> -> vector<8x512xf32>
    %155 = arith.addf %146, %154 : vector<8x512xf32>
    %c0_123 = arith.constant 0 : index
    %c0_124 = arith.constant 0 : index
    %156 = vector.load %arg5[%c0_123, %c0_124] : memref<8x1xf32, #tpu.memory_space<vmem>>, vector<8x1xf32>
    %157 = vector.broadcast %156 : vector<8x1xf32> to vector<8x512xf32>
    %158 = arith.addf %155, %157 : vector<8x512xf32>
    %cst_125 = arith.constant 0.000000e+00 : f32
    %159 = vector.broadcast %cst_125 : f32 to vector<8x512xf32>
    %160 = arith.maximumf %158, %159 : vector<8x512xf32>
    %c0_126 = arith.constant 0 : index
    %c0_127 = arith.constant 0 : index
    %161 = vector.load %arg7[%c0_126, %c0_127] : memref<8x512xf32, #tpu.memory_space<vmem>>, vector<8x512xf32>
    tpu.vector_store %arg7[%c0_126, %c0_127], %160 {strides = array<i32>} : memref<8x512xf32, #tpu.memory_space<vmem>>, vector<8x512xf32>,
    return
  }
  func.func @transform_0(%arg0: i32) -> (i32, i32) {
    %c0_i32 = arith.constant 0 : i32
    %c0_i32_0 = arith.constant 0 : i32
    return %c0_i32, %arg0 : i32, i32
  }
  func.func @transform_1(%arg0: i32) -> (i32, i32, i32) {
    %c0_i32 = arith.constant 0 : i32
    %c0_i32_0 = arith.constant 0 : i32
    %c0_i32_1 = arith.constant 0 : i32
    %c0_i32_2 = arith.constant 0 : i32
    return %c0_i32, %c0_i32_0, %c0_i32_1 : i32, i32, i32
  }
  func.func @transform_2(%arg0: i32) -> (i32, i32) {
    %c0_i32 = arith.constant 0 : i32
    %c0_i32_0 = arith.constant 0 : i32
    %c0_i32_1 = arith.constant 0 : i32
    return %c0_i32, %c0_i32_0 : i32, i32
  }
  func.func @transform_3(%arg0: i32) -> (i32, i32, i32) {
    %c0_i32 = arith.constant 0 : i32
    %c0_i32_0 = arith.constant 0 : i32
    %c0_i32_1 = arith.constant 0 : i32
    %c0_i32_2 = arith.constant 0 : i32
    return %c0_i32, %c0_i32_0, %c0_i32_1 : i32, i32, i32
  }
  func.func @transform_4(%arg0: i32) -> (i32, i32) {
    %c0_i32 = arith.constant 0 : i32
    %c0_i32_0 = arith.constant 0 : i32
    %c0_i32_1 = arith.constant 0 : i32
    return %c0_i32, %c0_i32_0 : i32, i32
  }
  func.func @transform_5(%arg0: i32) -> (i32, i32, i32) {
    %c0_i32 = arith.constant 0 : i32
    %c0_i32_0 = arith.constant 0 : i32
    %c0_i32_1 = arith.constant 0 : i32
    %c0_i32_2 = arith.constant 0 : i32
    return %c0_i32, %c0_i32_0, %c0_i32_1 : i32, i32, i32
  }
  func.func @transform_6(%arg0: i32) -> (i32, i32) {
    %c0_i32 = arith.constant 0 : i32
    %c0_i32_0 = arith.constant 0 : i32
    return %c0_i32, %arg0 : i32, i32
  }
}

</mosaic_0001>

<bundles_post_ra>
// kernel: double_conv.1
= control target key start
LH: loop header
LB: loop body
LE: loop exit
PB: predicated region body
PF: predicated region fallthrough
CT: control target
= control target key end

     0   :  { %s2344_s25 = smov 17   ;;  %s2346_s26 = smov 15   ;;  %v48_v39 = vlaneseq  ;;  %vm74_vm2 = vcmask 1043456   ;;  %vm70_vm3 = vcmask 31744   ;;  %vm1278_vm10 = vcmask 64512   ;;  %s3033_s0 = inlined_call_operand.vmem [shape: f32[4,512], index: 0, kind: input, shape index: {}]   ;;  %s3034_s5 = inlined_call_operand.vmem [shape: f32[9,1,512], index: 5, kind: input, shape index: {}]   ;;  %s3035_s1 = inlined_call_operand.vmem [shape: f32[9,8,4], index: 1, kind: input, shape index: {}]   ;;  %s3036_s2 = inlined_call_operand.vmem [shape: f32[8,1], index: 2, kind: input, shape index: {}]   ;;  %s3037_s4 = inlined_call_operand.vmem [shape: f32[8,1], index: 4, kind: input, shape index: {}]   ;;  %s3038_s3 = inlined_call_operand.vmem [shape: f32[9,8,8], index: 3, kind: input, shape index: {}]   ;;  %s3039_s6 = inlined_call_operand.vmem [shape: f32[8,512], index: 6, kind: output, shape index: {}]  }
   0x1   :  { %v2391_v0 = vld [vmem:[%s3033_s0 + $0x8] sm:$0xff]  ;;  %v2396_v1 = vld [vmem:[%s3033_s0] sm:$0xff]  ;;  %s2345_s0 = smov 16   ;;  %s2347_s27 = smov 1  }
   0x2   :  { %31 = vst [vmem:[#allocation1 + $0x10] ss:$2 sm:$0xff] %v2391_v0  ;;  %s2348_s28 = smov 127   ;;  %s2349_s29 = smov 113   ;;  %v2456_v42 = vand.u32 127, %v48_v39  ;;  %v69_v61 = vld [vmem:[%s3035_s1] sm:$0xff] }
   0x3   :  { %29 = vst [vmem:[#allocation1] ss:$2 sm:$0xff] %v2396_v1  ;;  %s2350_s30 = smov 112   ;;  %s2351_s7 = smov 111   ;;  %v2461_v44 = vld [vmem:[%s3034_s5] sm:$0xf] }
   0x4   :  { %vm50_vm0 = vcmp.lt.s32.totalorder %v2456_v42, 17  ;;  %v57_v45 = vperm.slane %v2461_v44, 0  ;;  %v58_v46 = vperm.slane %v2461_v44, 1  ;;  %v59_v47 = vperm.slane %v2461_v44, 2  ;;  %v2471_v50 = vld [vmem:[%s3034_s5 + $0x4] sm:$0xf] }
   0x5   :  { %v60_v48 = vperm.slane %v2461_v44, 3  ;;  %vm284_vm1 = vcmp.lt.s32.totalorder %v2456_v42, 16  ;;  %v294_v58 = vperm.slane %v2471_v50, 2  ;;  %vm424_vm4 = vcmp.lt.s32.totalorder %v2456_v42, 15 }
   0x6   :  { %vm564_vm5 = vcmp.lt.s32.totalorder %v2456_v42, 1  ;;  %vm704_vm6 = vcmp.lt.s32.totalorder %v2456_v42, 127  ;;  %vm844_vm7 = vcmp.lt.s32.totalorder %v2456_v42, 113  ;;  %vm984_vm8 = vcmp.lt.s32.totalorder %v2456_v42, 112 }
   0x7   :  { %vm1124_vm9 = vcmp.lt.s32.totalorder %v2456_v42, 111 }
   0x9   :  { %v35_v2 = vld.sshfl [vmem:[#allocation1 + $0x18] sm:$0xff pattern:$0x75316420]  ;;  %v34_v3 = vld.sshfl [vmem:[#allocation1 + $0x10] sm:$0xff pattern:$0x75316420] }
   0xa   :  { %46 = vrot.lane.b32.xlu1 %v35_v2, %s2344_s25  ;;  %v33_v4 = vld.sshfl [vmem:[#allocation1 + $0x8] sm:$0xff pattern:$0x75316420]  ;;  %169 = vst [vmem:[#allocation1 + $0x10] ss:$2 sm:$0xff] %v2391_v0  ;;  %v3061_v2 = vperm.slane %v2471_v50, 3 }
   0xb   :  { %42 = vrot.lane.b32.xlu0 %v33_v4, %s2344_s25  ;;  %v32_v5 = vld.sshfl [vmem:[#allocation1] sm:$0xff pattern:$0x75316420]  ;;  %v293_v4 = vperm.slane %v2471_v50, 1 }
   0xc   :  { %167 = vst [vmem:[#allocation1] ss:$2 sm:$0xff] %v2396_v1 }
  0x11   :  { %v2404_v6 = vld.sshfl [vmem:[#allocation1 + $0x10] sm:$0xff pattern:$0x75316420]  ;;  %v2406_v7 = vld.sshfl [vmem:[#allocation1 + $0x18] sm:$0xff pattern:$0x75316420] }
  0x12   :  { %267 = vst [vmem:[#allocation1 + $0x10] ss:$2 sm:$0xff] %v2391_v0  ;;  %40 = vrot.lane.b32.xlu1 %v32_v5, %s2344_s25 }
  0x13   :  { %44 = vrot.lane.b32.xlu0 %v34_v3, %s2344_s25  ;;  %v2411_v8 = vld.sshfl [vmem:[#allocation1] sm:$0xff pattern:$0x75316420]  ;;  %v2413_v9 = vld.sshfl [vmem:[#allocation1 + $0x8] sm:$0xff pattern:$0x75316420] }
  0x14   :  { %265 = vst [vmem:[#allocation1] ss:$2 sm:$0xff] %v2396_v1  ;;  %v3062_v3 = vperm.slane %v2471_v50, 0 }
  0x19   :  { %v270_v10 = vld.sshfl [vmem:[#allocation1 + $0x10] sm:$0xff pattern:$0x75316420]  ;;  %v271_v11 = vld.sshfl [vmem:[#allocation1 + $0x18] sm:$0xff pattern:$0x75316420] }
  0x1a   :  { %407 = vst [vmem:[#allocation1 + $0x10] ss:$2 sm:$0xff] %v2391_v0 }
  0x1b   :  { %282 = vrot.lane.b32.xlu0 %v271_v11, %s2345_s0  ;;  %v268_v12 = vld.sshfl [vmem:[#allocation1] sm:$0xff pattern:$0x75316420]  ;;  %v269_v13 = vld.sshfl [vmem:[#allocation1 + $0x8] sm:$0xff pattern:$0x75316420] }
  0x1c   :  { %276 = vrot.lane.b32.xlu1 %v268_v12, %s2345_s0  ;;  %278 = vrot.lane.b32.xlu2 %v269_v13, %s2345_s0  ;;  %405 = vst [vmem:[#allocation1] ss:$2 sm:$0xff] %v2396_v1 }
  0x21   :  { %v410_v14 = vld.sshfl [vmem:[#allocation1 + $0x10] sm:$0xff pattern:$0x75316420]  ;;  %v411_v15 = vld.sshfl [vmem:[#allocation1 + $0x18] sm:$0xff pattern:$0x75316420] }
  0x22   :  { %547 = vst [vmem:[#allocation1 + $0x10] ss:$2 sm:$0xff] %v2391_v0 }
  0x23   :  { %420 = vrot.lane.b32.xlu0 %v410_v14, %s2346_s26  ;;  %v408_v16 = vld.sshfl [vmem:[#allocation1] sm:$0xff pattern:$0x75316420]  ;;  %v409_v17 = vld.sshfl [vmem:[#allocation1 + $0x8] sm:$0xff pattern:$0x75316420] }
  0x24   :  { %545 = vst [vmem:[#allocation1] ss:$2 sm:$0xff] %v2396_v1  ;;  %422 = vrot.lane.b32.xlu1 %v411_v15, %s2346_s26  ;;  %280 = vrot.lane.b32.xlu2 %v270_v10, %s2345_s0 }
  0x29   :  { %v551_v18 = vld.sshfl [vmem:[#allocation1 + $0x18] sm:$0xff pattern:$0x75316420]  ;;  %v550_v19 = vld.sshfl [vmem:[#allocation1 + $0x10] sm:$0xff pattern:$0x75316420] }
  0x2a   :  { %687 = vst [vmem:[#allocation1 + $0x10] ss:$2 sm:$0xff] %v2391_v0 }
  0x2b   :  { %v549_v20 = vld.sshfl [vmem:[#allocation1 + $0x8] sm:$0xff pattern:$0x75316420]  ;;  %v548_v21 = vld.sshfl [vmem:[#allocation1] sm:$0xff pattern:$0x75316420] }
  0x2c   :  { %560 = vrot.lane.b32.xlu1 %v550_v19, %s2347_s27  ;;  %558 = vrot.lane.b32.xlu0 %v549_v20, %s2347_s27  ;;  %685 = vst [vmem:[#allocation1] ss:$2 sm:$0xff] %v2396_v1 }
  0x2d   :  { %418 = vrot.lane.b32.xlu2 %v409_v17, %s2346_s26 }
  0x31   :  { %v690_v22 = vld.sshfl [vmem:[#allocation1 + $0x10] sm:$0xff pattern:$0x75316420]  ;;  %v691_v23 = vld.sshfl [vmem:[#allocation1 + $0x18] sm:$0xff pattern:$0x75316420] }
  0x32   :  { %827 = vst [vmem:[#allocation1 + $0x10] ss:$2 sm:$0xff] %v2391_v0 }
  0x33   :  { %v688_v24 = vld.sshfl [vmem:[#allocation1] sm:$0xff pattern:$0x75316420]  ;;  %v689_v25 = vld.sshfl [vmem:[#allocation1 + $0x8] sm:$0xff pattern:$0x75316420] }
  0x34   :  { %556 = vrot.lane.b32.xlu0 %v548_v21, %s2347_s27  ;;  %696 = vrot.lane.b32.xlu1 %v688_v24, %s2348_s28  ;;  %825 = vst [vmem:[#allocation1] ss:$2 sm:$0xff] %v2396_v1 }
  0x35   :  { %416 = vrot.lane.b32.xlu2 %v408_v16, %s2346_s26 }
  0x39   :  { %v830_v26 = vld.sshfl [vmem:[#allocation1 + $0x10] sm:$0xff pattern:$0x75316420]  ;;  %v831_v27 = vld.sshfl [vmem:[#allocation1 + $0x18] sm:$0xff pattern:$0x75316420] }
  0x3a   :  { %967 = vst [vmem:[#allocation1 + $0x10] ss:$2 sm:$0xff] %v2391_v0 }
  0x3b   :  { %v828_v28 = vld.sshfl [vmem:[#allocation1] sm:$0xff pattern:$0x75316420]  ;;  %v829_v29 = vld.sshfl [vmem:[#allocation1 + $0x8] sm:$0xff pattern:$0x75316420] }
  0x3c   :  { %702 = vrot.lane.b32.xlu0 %v691_v23, %s2348_s28  ;;  %698 = vrot.lane.b32.xlu1 %v689_v25, %s2348_s28  ;;  %965 = vst [vmem:[#allocation1] ss:$2 sm:$0xff] %v2396_v1 }
  0x3d   :  { %562 = vrot.lane.b32.xlu2 %v551_v18, %s2347_s27 }
  0x41   :  { %v970_v30 = vld.sshfl [vmem:[#allocation1 + $0x10] sm:$0xff pattern:$0x75316420]  ;;  %v971_v31 = vld.sshfl [vmem:[#allocation1 + $0x18] sm:$0xff pattern:$0x75316420] }
  0x42   :  { %1107 = vst [vmem:[#allocation1 + $0x10] ss:$2 sm:$0xff] %v2391_v0  ;;  %v2505_v0 = vld [vmem:[%s3034_s5 + $0x8] sm:$0xf] }
  0x43   :  { %v968_v32 = vld.sshfl [vmem:[#allocation1] sm:$0xff pattern:$0x75316420]  ;;  %v969_v33 = vld.sshfl [vmem:[#allocation1 + $0x8] sm:$0xff pattern:$0x75316420] }
  0x44   :  { %840 = vrot.lane.b32.xlu0 %v830_v26, %s2349_s29  ;;  %842 = vrot.lane.b32.xlu1 %v831_v27, %s2349_s29  ;;  %1105 = vst [vmem:[#allocation1] ss:$2 sm:$0xff] %v2396_v1  ;;  %v433_v10 = vperm.slane %v2505_v0, 1  ;;  %v3059_v18 = vperm.slane %v2505_v0, 2  ;;  %v3058_v19 = vperm.slane %v2505_v0, 3  ;;  %v432_v20 = vperm.slane %v2505_v0, 0 }
  0x45   :  { %700 = vrot.lane.b32.xlu2 %v690_v22, %s2348_s28 }
  0x49   :  { %v1111_v35 = vld.sshfl [vmem:[#allocation1 + $0x18] sm:$0xff pattern:$0x75316420]  ;;  %v1110_v37 = vld.sshfl [vmem:[#allocation1 + $0x10] sm:$0xff pattern:$0x75316420] }
  0x4b   :  { %v1108_v34 = vld.sshfl [vmem:[#allocation1] sm:$0xff pattern:$0x75316420]  ;;  %v1109_v36 = vld.sshfl [vmem:[#allocation1 + $0x8] sm:$0xff pattern:$0x75316420] }
  0x4c   :  { %980 = vrot.lane.b32.xlu1 %v970_v30, %s2350_s30  ;;  %976 = vrot.lane.b32.xlu0 %v968_v32, %s2350_s30  ;;  %v2220_v30 = vld [vmem:[%s3035_s1 + $0x8] sm:$0xff] }
  0x4d   :  { %836 = vrot.lane.b32.xlu2 %v828_v28, %s2349_s29 }
  0x54   :  { %978 = vrot.lane.b32.xlu0 %v969_v33, %s2350_s30  ;;  %1116 = vrot.lane.b32.xlu1 %v1108_v34, %s2351_s7 }
  0x55   :  { %838 = vrot.lane.b32.xlu2 %v829_v29, %s2349_s29 }
  0x5c   :  { %1122 = vrot.lane.b32.xlu0 %v1111_v35, %s2351_s7  ;;  %1118 = vrot.lane.b32.xlu1 %v1109_v36, %s2351_s7 }
  0x5d   :  { %982 = vrot.lane.b32.xlu2 %v971_v31, %s2350_s30  ;;  %v2574_v31 = vld [vmem:[%s3034_s5 + $0xc] sm:$0xf] }
  0x5e   :  { %v3056_v32 = vperm.slane %v2574_v31, 3  ;;  %v3057_v33 = vperm.slane %v2574_v31, 2 }
  0x65   :  { %1120 = vrot.lane.b32.xlu2 %v1110_v37, %s2351_s7 }
  0x76   :  { %v279_v38 = vpop.permute.xlu2 %278 }
  0x7c   :  { %v47_v40 = vpop.permute.xlu1 %46 }
  0x7d   :  { %v43_v41 = vpop.permute.xlu0 %42 }
  0x7e   :  { %v281_v43 = vpop.permute.xlu2 %280 }
  0x7f   :  { %v286_v63 = vsel %vm284_vm1, %v279_v38, %v281_v43 }
  0x80   :  { %v302_v1 = vmul.f32 %v294_v58, %v286_v63 }
  0x84   :  { %v41_v49 = vpop.permute.xlu1 %40 }
  0x85   :  { %v45_v51 = vpop.permute.xlu0 %44  ;;  %v53_v52 = vsel %vm50_vm0, %v41_v49, %v43_v41  ;;  %v54_v53 = vsel %vm50_vm0, %v47_v40, %v41_v49  ;;  %v573_v49 = vperm.slane %v2574_v31, 1 }
  0x86   :  { %v51_v54 = vsel %vm50_vm0, %v45_v51, %v47_v40  ;;  %v52_v55 = vsel %vm50_vm0, %v43_v41, %v45_v51  ;;  %v65_v56 = vmul.f32 %v57_v45, %v54_v53  ;;  %v66_v57 = vmul.f32 %v58_v46, %v53_v52  ;;  %v2230_v41 = vld [vmem:[%s3035_s1 + $0x10] sm:$0xff] }
  0x87   :  { %v67_v59 = vmul.f32 %v59_v47, %v52_v55  ;;  %v68_v60 = vmul.f32 %v60_v48, %v51_v54  ;;  %v419_v62 = vpop.permute.xlu2 %418 }
  0x88   :  { %2203 = vmatpush.msk.msra.mxu0 %vm74_vm2, %v65_v56  ;;  %2205 = vmatpush.msk.msra.mxu1 %vm74_vm2, %v66_v57 }
  0x89   :  { %2207 = vmatpush.msk.msra.mxu2 %vm74_vm2, %v67_v59  ;;  %2209 = vmatpush.msk.msra.mxu3 %vm74_vm2, %v68_v60  ;;  %v2240_v59 = vld [vmem:[%s3035_s1 + $0x18] sm:$0xff]  ;;  %v2618_v60 = vld [vmem:[%s3034_s5 + $0x14] sm:$0xf] }
  0x8a   :  { %2204 = vmatmul.msk.f32.vlgmr.msra.gmra.mxu0 %vm70_vm3, %v69_v61  ;;  %2206 = vmatmul.msk.f32.vlgmr.msra.gmra.mxu1 %vm70_vm3, %v69_v61  ;;  %v3051_v63 = vperm.slane %v2618_v60, 3 }
  0x8b   :  { %2208 = vmatmul.msk.f32.vlgmr.msra.gmra.mxu2 %vm70_vm3, %v69_v61  ;;  %2210 = vmatmul.msk.f32.vlgmr.msra.gmra.mxu3 %vm70_vm3, %v69_v61  ;;  %v2628_v61 = vld [vmem:[%s3034_s5 + $0x18] sm:$0xf] }
  0x8c   :  { %2215 = vmatpush.msk.msrb.mxu2 %vm74_vm2, %v2404_v6  ;;  %2211 = vmatpush.msk.msrb.mxu0 %vm74_vm2, %v2411_v8 }
  0x8d   :  { %v283_v5 = vpop.permute.xlu0 %282  ;;  %2213 = vmatpush.msk.msrb.mxu1 %vm74_vm2, %v2413_v9  ;;  %2217 = vmatpush.msk.msrb.mxu3 %vm74_vm2, %v2406_v7  ;;  %v2202_v7 = vld [vmem:[%s3035_s1 + $0x20] sm:$0xff] }
  0x8e   :  { %2225 = vmatpush.msk.msra.mxu2 %vm74_vm2, %v302_v1  ;;  %v285_v6 = vsel %vm284_vm1, %v281_v43, %v283_v5  ;;  %v277_v11 = vpop.permute.xlu1 %276  ;;  %v3060_v43 = vperm.slane %v2574_v31, 0  ;;  %v3055_v1 = vperm.slane %v2618_v60, 0 }
  0x8f   :  { %v303_v8 = vmul.f32 %v3061_v2, %v285_v6  ;;  %v287_v12 = vsel %vm284_vm1, %v277_v11, %v279_v38  ;;  %v288_v9 = vsel %vm284_vm1, %v283_v5, %v277_v11  ;;  %v417_v13 = vpop.permute.xlu2 %416  ;;  %v3054_v5 = vperm.slane %v2618_v60, 1 }
  0x90   :  { %v300_v14 = vmul.f32 %v3062_v3, %v288_v9  ;;  %v301_v15 = vmul.f32 %v293_v4, %v287_v12  ;;  %v427_v16 = vsel %vm424_vm4, %v417_v13, %v419_v62 }
  0x91   :  { %2227 = vmatpush.msk.msra.mxu3 %vm74_vm2, %v303_v8  ;;  %v441_v17 = vmul.f32 %v433_v10, %v427_v16  ;;  %v3053_v8 = vperm.slane %v2628_v61, 0 }
  0x92   :  { %2221 = vmatpush.msk.msra.mxu0 %vm74_vm2, %v300_v14  ;;  %2223 = vmatpush.msk.msra.mxu1 %vm74_vm2, %v301_v15 }
  0x93   :  { %2212 = vmatmul.msk.f32.vlgmr.msrb.gmra.mxu0 %vm70_vm3, %v2202_v7  ;;  %2214 = vmatmul.msk.f32.vlgmr.msrb.gmra.mxu1 %vm70_vm3, %v2202_v7 }
  0x94   :  { %2216 = vmatmul.msk.f32.vlgmr.msrb.gmra.mxu2 %vm70_vm3, %v2202_v7  ;;  %2218 = vmatmul.msk.f32.vlgmr.msrb.gmra.mxu3 %vm70_vm3, %v2202_v7 }
  0x95   :  { %v421_v21 = vpop.permute.xlu0 %420  ;;  %2233 = vmatpush.msk.msrb.mxu1 %vm74_vm2, %v441_v17 }
  0x96   :  { %v426_v22 = vsel %vm424_vm4, %v419_v62, %v421_v21  ;;  %v423_v23 = vpop.permute.xlu1 %422  ;;  %v3052_v62 = vperm.slane %v2618_v60, 2 }
  0x97   :  { %v442_v24 = vmul.f32 %v3059_v18, %v426_v22  ;;  %v425_v25 = vsel %vm424_vm4, %v421_v21, %v423_v23  ;;  %v428_v26 = vsel %vm424_vm4, %v423_v23, %v417_v13  ;;  %v563_v27 = vpop.permute.xlu2 %562  ;;  %v2250_v22 = vld [vmem:[%s3035_s1 + $0x28] sm:$0xff] }
  0x98   :  { %v443_v28 = vmul.f32 %v3058_v19, %v425_v25  ;;  %v440_v29 = vmul.f32 %v432_v20, %v428_v26  ;;  %v3047_v25 = vperm.slane %v2628_v61, 2  ;;  %v3050_v26 = vperm.slane %v2628_v61, 3 }
  0x99   :  { %2235 = vmatpush.msk.msrb.mxu2 %vm74_vm2, %v442_v24 }
  0x9a   :  { %2231 = vmatpush.msk.msrb.mxu0 %vm74_vm2, %v440_v29  ;;  %2237 = vmatpush.msk.msrb.mxu3 %vm74_vm2, %v443_v28  ;;  %v1245_v28 = vld [vmem:[%s3036_s2] sm:$0xff] }
  0x9b   :  { %2222 = vmatmul.msk.f32.vlgmr.msra.gmra.mxu0 %vm70_vm3, %v2220_v30  ;;  %2224 = vmatmul.msk.f32.vlgmr.msra.gmra.mxu1 %vm70_vm3, %v2220_v30 }
  0x9c   :  { %2226 = vmatmul.msk.f32.vlgmr.msra.gmra.mxu2 %vm70_vm3, %v2220_v30  ;;  %2228 = vmatmul.msk.f32.vlgmr.msra.gmra.mxu3 %vm70_vm3, %v2220_v30 }
  0x9e   :  { %v561_v34 = vpop.permute.xlu1 %560  ;;  %v559_v35 = vpop.permute.xlu0 %558 }
  0x9f   :  { %v565_v36 = vsel %vm564_vm5, %v561_v34, %v563_v27  ;;  %v566_v37 = vsel %vm564_vm5, %v559_v35, %v561_v34  ;;  %v701_v38 = vpop.permute.xlu2 %700  ;;  %v2352_v34 = vmov 0  }
  0xa0   :  { %v583_v39 = vmul.f32 %v3056_v32, %v565_v36  ;;  %v582_v40 = vmul.f32 %v3057_v33, %v566_v37  ;;  %2342 = vset.pattern.permute.xlu2 %v2352_v34  ;;  %2343 = vset.pattern.permute.xlu0 %v2352_v34 }
  0xa1   :  { %1248 = vperm.xlu2 %2342, %v1245_v28  }
  0xa2   :  { %2245 = vmatpush.msk.msra.mxu2 %vm74_vm2, %v582_v40  ;;  %2247 = vmatpush.msk.msra.mxu3 %vm74_vm2, %v583_v39 }
  0xa3   :  { %2232 = vmatmul.msk.f32.vlgmr.msrb.gmra.mxu0 %vm70_vm3, %v2230_v41  ;;  %2234 = vmatmul.msk.f32.vlgmr.msrb.gmra.mxu1 %vm70_vm3, %v2230_v41 }
  0xa4   :  { %2236 = vmatmul.msk.f32.vlgmr.msrb.gmra.mxu2 %vm70_vm3, %v2230_v41  ;;  %2238 = vmatmul.msk.f32.vlgmr.msrb.gmra.mxu3 %vm70_vm3, %v2230_v41  ;;  %v2260_v41 = vld [vmem:[%s3035_s1 + $0x30] sm:$0xff] }
  0xa6   :  { %v557_v51 = vpop.permute.xlu0 %556  ;;  %v697_v52 = vpop.permute.xlu1 %696 }
  0xa7   :  { %v567_v53 = vsel %vm564_vm5, %v557_v51, %v559_v35  ;;  %v568_v54 = vsel %vm564_vm5, %v563_v27, %v557_v51  ;;  %v837_v55 = vpop.permute.xlu2 %836  ;;  %v3048_v27 = vperm.slane %v2628_v61, 1  ;;  %v2694_v51 = vld [vmem:[%s3034_s5 + $0x1c] sm:$0xf] }
  0xa8   :  { %v580_v56 = vmul.f32 %v3060_v43, %v568_v54  ;;  %v581_v57 = vmul.f32 %v573_v49, %v567_v53  ;;  %v3049_v54 = vperm.slane %v2694_v51, 3 }
  0xaa   :  { %2241 = vmatpush.msk.msra.mxu0 %vm74_vm2, %v580_v56  ;;  %2243 = vmatpush.msk.msra.mxu1 %vm74_vm2, %v581_v57 }
  0xab   :  { %2242 = vmatmul.msk.f32.vlgmr.msra.gmra.mxu0 %vm70_vm3, %v2240_v59  ;;  %2244 = vmatmul.msk.f32.vlgmr.msra.gmra.mxu1 %vm70_vm3, %v2240_v59 }
  0xac   :  { %2246 = vmatmul.msk.f32.vlgmr.msra.gmra.mxu2 %vm70_vm3, %v2240_v59  ;;  %2248 = vmatmul.msk.f32.vlgmr.msra.gmra.mxu3 %vm70_vm3, %v2240_v59 }
  0xae   :  { %v703_v6 = vpop.permute.xlu0 %702  ;;  %v699_v11 = vpop.permute.xlu1 %698 }
  0xaf   :  { %v705_v12 = vsel %vm704_vm6, %v701_v38, %v703_v6  ;;  %v708_v9 = vsel %vm704_vm6, %v703_v6, %v697_v52  ;;  %v706_v13 = vsel %vm704_vm6, %v699_v11, %v701_v38  ;;  %v707_v14 = vsel %vm704_vm6, %v697_v52, %v699_v11  ;;  %v839_v15 = vpop.permute.xlu2 %838 }
  0xb0   :  { %v722_v7 = vmul.f32 %v3052_v62, %v705_v12  ;;  %v723_v16 = vmul.f32 %v3051_v63, %v708_v9  ;;  %v720_v17 = vmul.f32 %v3055_v1, %v707_v14  ;;  %v721_v21 = vmul.f32 %v3054_v5, %v706_v13  ;;  %v2270_v12 = vld [vmem:[%s3035_s1 + $0x38] sm:$0xff] }
  0xb1   :  { %v847_v23 = vsel %vm844_vm7, %v837_v55, %v839_v15  ;;  %v3046_v52 = vperm.slane %v2694_v51, 2  ;;  %v3045_v9 = vperm.slane %v2694_v51, 0  ;;  %v3044_v13 = vperm.slane %v2694_v51, 1 }
  0xb2   :  { %2251 = vmatpush.msk.msrb.mxu0 %vm74_vm2, %v720_v17  ;;  %2253 = vmatpush.msk.msrb.mxu1 %vm74_vm2, %v721_v21  ;;  %v860_v24 = vmul.f32 %v3053_v8, %v847_v23 }
  0xb3   :  { %2255 = vmatpush.msk.msrb.mxu2 %vm74_vm2, %v722_v7  ;;  %2257 = vmatpush.msk.msrb.mxu3 %vm74_vm2, %v723_v16 }
  0xb4   :  { %2252 = vmatmul.msk.f32.vlgmr.msrb.gmra.mxu0 %vm70_vm3, %v2250_v22  ;;  %2254 = vmatmul.msk.f32.vlgmr.msrb.gmra.mxu1 %vm70_vm3, %v2250_v22 }
  0xb5   :  { %2256 = vmatmul.msk.f32.vlgmr.msrb.gmra.mxu2 %vm70_vm3, %v2250_v22  ;;  %2258 = vmatmul.msk.f32.vlgmr.msrb.gmra.mxu3 %vm70_vm3, %v2250_v22  ;;  %v2734_v22 = vld [vmem:[%s3034_s5 + $0x20] sm:$0xf] }
  0xb6   :  { %v841_v29 = vpop.permute.xlu0 %840  ;;  %v843_v30 = vpop.permute.xlu1 %842  ;;  %2261 = vmatpush.msk.msra.mxu0 %vm74_vm2, %v860_v24  ;;  %v3041_v24 = vperm.slane %v2734_v22, 2  ;;  %v3040_v28 = vperm.slane %v2734_v22, 3 }
  0xb7   :  { %v845_v35 = vsel %vm844_vm7, %v841_v29, %v843_v30  ;;  %v848_v36 = vsel %vm844_vm7, %v843_v30, %v837_v55  ;;  %v846_v37 = vsel %vm844_vm7, %v839_v15, %v841_v29  ;;  %v983_v53 = vpop.permute.xlu2 %982  ;;  %v3043_v29 = vperm.slane %v2734_v22, 0 }
  0xb8   :  { %v862_v38 = vmul.f32 %v3047_v25, %v845_v35  ;;  %v863_v39 = vmul.f32 %v3050_v26, %v848_v36  ;;  %v861_v40 = vmul.f32 %v3048_v27, %v846_v37  ;;  %v3042_v30 = vperm.slane %v2734_v22, 1 }
  0xba   :  { %2263 = vmatpush.msk.msra.mxu1 %vm74_vm2, %v861_v40  ;;  %2265 = vmatpush.msk.msra.mxu2 %vm74_vm2, %v862_v38 }
  0xbb   :  { %2267 = vmatpush.msk.msra.mxu3 %vm74_vm2, %v863_v39 }
  0xbc   :  { %2262 = vmatmul.msk.f32.vlgmr.msra.gmra.mxu0 %vm70_vm3, %v2260_v41  ;;  %2264 = vmatmul.msk.f32.vlgmr.msra.gmra.mxu1 %vm70_vm3, %v2260_v41 }
  0xbd   :  { %2266 = vmatmul.msk.f32.vlgmr.msra.gmra.mxu2 %vm70_vm3, %v2260_v41  ;;  %2268 = vmatmul.msk.f32.vlgmr.msra.gmra.mxu3 %vm70_vm3, %v2260_v41 }
  0xbe   :  { %v981_v55 = vpop.permute.xlu1 %980  ;;  %v977_v56 = vpop.permute.xlu0 %976 }
  0xbf   :  { %v985_v57 = vsel %vm984_vm8, %v981_v55, %v983_v53  ;;  %v988_v59 = vsel %vm984_vm8, %v983_v53, %v977_v56  ;;  %v1121_v23 = vpop.permute.xlu2 %1120 }
  0xc0   :  { %v1002_v6 = vmul.f32 %v3046_v52, %v985_v57  ;;  %v1003_v11 = vmul.f32 %v3049_v54, %v988_v59 }
  0xc2   :  { %2275 = vmatpush.msk.msrb.mxu2 %vm74_vm2, %v1002_v6  ;;  %2277 = vmatpush.msk.msrb.mxu3 %vm74_vm2, %v1003_v11 }
  0xc5   :  { %2276 = vmatmul.msk.f32.vlgmr.msrb.gmra.mxu2 %vm70_vm3, %v2270_v12  ;;  %2278 = vmatmul.msk.f32.vlgmr.msrb.gmra.mxu3 %vm70_vm3, %v2270_v12 }
  0xc6   :  { %v979_v14 = vpop.permute.xlu0 %978  ;;  %v1117_v15 = vpop.permute.xlu1 %1116 }
  0xc7   :  { %v986_v7 = vsel %vm984_vm8, %v979_v14, %v981_v55  ;;  %v987_v16 = vsel %vm984_vm8, %v977_v56, %v979_v14  ;;  %v2280_v56 = vld [vmem:[%s3035_s1 + $0x40] sm:$0xff] }
  0xc8   :  { %v1000_v17 = vmul.f32 %v3045_v9, %v987_v16  ;;  %v1001_v21 = vmul.f32 %v3044_v13, %v986_v7 }
  0xca   :  { %2271 = vmatpush.msk.msrb.mxu0 %vm74_vm2, %v1000_v17  ;;  %2273 = vmatpush.msk.msrb.mxu1 %vm74_vm2, %v1001_v21 }
  0xcb   :  { %2272 = vmatmul.msk.f32.vlgmr.msrb.gmra.mxu0 %vm70_vm3, %v2270_v12  ;;  %2274 = vmatmul.msk.f32.vlgmr.msrb.gmra.mxu1 %vm70_vm3, %v2270_v12 }
  0xce   :  { %v1123_v34 = vpop.permute.xlu0 %1122  ;;  %v1119_v35 = vpop.permute.xlu1 %1118 }
  0xcf   :  { %v1125_v36 = vsel %vm1124_vm9, %v1121_v23, %v1123_v34  ;;  %v1128_v37 = vsel %vm1124_vm9, %v1123_v34, %v1117_v15  ;;  %v1126_v38 = vsel %vm1124_vm9, %v1119_v35, %v1121_v23  ;;  %v1127_v39 = vsel %vm1124_vm9, %v1117_v15, %v1119_v35 }
  0xd0   :  { %v1142_v40 = vmul.f32 %v3041_v24, %v1125_v36  ;;  %v1143_v41 = vmul.f32 %v3040_v28, %v1128_v37  ;;  %v1140_v53 = vmul.f32 %v3043_v29, %v1127_v39  ;;  %v1141_v55 = vmul.f32 %v3042_v30, %v1126_v38 }
  0xd2   :  { %2281 = vmatpush.msk.msra.mxu0 %vm74_vm2, %v1140_v53  ;;  %2283 = vmatpush.msk.msra.mxu1 %vm74_vm2, %v1141_v55 }
  0xd3   :  { %2285 = vmatpush.msk.msra.mxu2 %vm74_vm2, %v1142_v40  ;;  %2287 = vmatpush.msk.msra.mxu3 %vm74_vm2, %v1143_v41 }
  0xd4   :  { %2282 = vmatmul.msk.f32.vlgmr.msra.gmra.mxu0 %vm70_vm3, %v2280_v56  ;;  %2284 = vmatmul.msk.f32.vlgmr.msra.gmra.mxu1 %vm70_vm3, %v2280_v56 }
  0xd5   :  { %2286 = vmatmul.msk.f32.vlgmr.msra.gmra.mxu2 %vm70_vm3, %v2280_v56  ;;  %2288 = vmatmul.msk.f32.vlgmr.msra.gmra.mxu3 %vm70_vm3, %v2280_v56 }
 0x107   :  { %v104_v57 = vpop.f32.mrf.mxu0  ;;  %v124_v59 = vpop.f32.mrf.mxu1 }
 0x10e   :  { %v144_v6 = vpop.f32.mrf.mxu2  ;;  %v164_v11 = vpop.f32.mrf.mxu3 }
 0x110   :  { %v202_v12 = vpop.f32.mrf.mxu0  ;;  %v222_v14 = vpop.f32.mrf.mxu1 }
 0x111   :  { %v223_v13 = vadd.f32 %v222_v14, %v124_v59  ;;  %v203_v27 = vadd.f32 %v202_v12, %v104_v57 }
 0x117   :  { %v242_v15 = vpop.f32.mrf.mxu2  ;;  %v262_v7 = vpop.f32.mrf.mxu3 }
 0x118   :  { %v358_v16 = vpop.f32.mrf.mxu1  ;;  %v338_v17 = vpop.f32.mrf.mxu0  ;;  %v263_v29 = vadd.f32 %v262_v7, %v164_v11  ;;  %v243_v63 = vadd.f32 %v242_v15, %v144_v6 }
 0x119   :  { %v402_v9 = vadd.f32 %v358_v16, %v223_v13  ;;  %v401_v1 = vadd.f32 %v338_v17, %v203_v27  ;;  %v2180_v16 = vld [vmem:[%s3037_s4] sm:$0xff] }
 0x11f   :  { %v378_v21 = vpop.f32.mrf.mxu2  ;;  %v398_v23 = vpop.f32.mrf.mxu3 }
 0x120   :  { %v498_v34 = vpop.f32.mrf.mxu1  ;;  %v478_v35 = vpop.f32.mrf.mxu0  ;;  %v404_v54 = vadd.f32 %v398_v23, %v263_v29  ;;  %v403_v19 = vadd.f32 %v378_v21, %v243_v63 }
 0x121   :  { %v542_v26 = vadd.f32 %v498_v34, %v402_v9  ;;  %v541_v18 = vadd.f32 %v478_v35, %v401_v1  ;;  %v1249_v9 = vpop.permute.xlu2 %1248 }
 0x127   :  { %v518_v36 = vpop.f32.mrf.mxu2  ;;  %v538_v37 = vpop.f32.mrf.mxu3 }
 0x128   :  { %v638_v38 = vpop.f32.mrf.mxu1  ;;  %v618_v39 = vpop.f32.mrf.mxu0  ;;  %v544_v32 = vadd.f32 %v538_v37, %v404_v54  ;;  %v543_v2 = vadd.f32 %v518_v36, %v403_v19 }
 0x129   :  { %v682_v8 = vadd.f32 %v638_v38, %v542_v26  ;;  %v681_v3 = vadd.f32 %v618_v39, %v541_v18 }
 0x12f   :  { %v658_v40 = vpop.f32.mrf.mxu2  ;;  %v678_v41 = vpop.f32.mrf.mxu3 }
 0x130   :  { %v684_v11 = vadd.f32 %v678_v41, %v544_v32  ;;  %v683_v7 = vadd.f32 %v658_v40, %v543_v2 }
 0x131   :  { %v778_v53 = vpop.f32.mrf.mxu1  ;;  %v758_v55 = vpop.f32.mrf.mxu0 }
 0x132   :  { %v822_v33 = vadd.f32 %v778_v53, %v682_v8  ;;  %v821_v57 = vadd.f32 %v758_v55, %v681_v3 }
 0x138   :  { %v798_v56 = vpop.f32.mrf.mxu2  ;;  %v818_v28 = vpop.f32.mrf.mxu3 }
 0x139   :  { %v918_v24 = vpop.f32.mrf.mxu1  ;;  %v898_v30 = vpop.f32.mrf.mxu0  ;;  %v823_v12 = vadd.f32 %v798_v56, %v683_v7  ;;  %v824_v26 = vadd.f32 %v818_v28, %v684_v11 }
 0x13a   :  { %v962_v43 = vadd.f32 %v918_v24, %v822_v33  ;;  %v961_v15 = vadd.f32 %v898_v30, %v821_v57  ;;  %v2289_v57 = vld [vmem:[%s3038_s3 + $0x20] sm:$0xff] }
 0x140   :  { %v938_v52 = vpop.f32.mrf.mxu2  ;;  %v958_v25 = vpop.f32.mrf.mxu3 }
 0x141   :  { %v963_v8 = vadd.f32 %v938_v52, %v823_v12  ;;  %v964_v63 = vadd.f32 %v958_v25, %v824_v26 }
 0x148   :  { %v1058_v62 = vpop.f32.mrf.mxu1  ;;  %v1038_v5 = vpop.f32.mrf.mxu0 }
 0x149   :  { %v1078_v59 = vpop.f32.mrf.mxu2  ;;  %v1098_v13 = vpop.f32.mrf.mxu3  ;;  %v1102_v14 = vadd.f32 %v1058_v62, %v962_v43  ;;  %v1101_v1 = vadd.f32 %v1038_v5, %v961_v15 }
 0x14a   :  { %v1103_v18 = vadd.f32 %v1078_v59, %v963_v8  ;;  %v1104_v19 = vadd.f32 %v1098_v13, %v964_v63  ;;  %v1277_v13 = vld [vmem:[%s3038_s3] sm:$0xff] }
 0x151   :  { %v1198_v29 = vpop.f32.mrf.mxu1  ;;  %v1178_v27 = vpop.f32.mrf.mxu0 }
 0x152   :  { %v1242_v6 = vadd.f32 %v1198_v29, %v1102_v14  ;;  %v1241_v32 = vadd.f32 %v1178_v27, %v1101_v1 }
 0x154   :  { %v1252_v54 = vadd.f32 %v1249_v9, %v1242_v6  ;;  %v1251_v62 = vadd.f32 %v1249_v9, %v1241_v32 }
 0x156   :  { %v2772_v33 = vmax.f32 %v1252_v54, 0.0  ;;  %v1255_v30 = vmax.f32 %v1251_v62, 0.0 }
 0x158   :  { %v1218_v24 = vpop.f32.mrf.mxu2  ;;  %v1238_v43 = vpop.f32.mrf.mxu3  ;;  %1552 = vrot.lane.b32.xlu2 %v2772_v33, %s2346_s26  ;;  %1447 = vrot.lane.b32.xlu1 %v2772_v33, %s2345_s0 }
 0x159   :  { %v1243_v2 = vadd.f32 %v1218_v24, %v1103_v18  ;;  %v1244_v3 = vadd.f32 %v1238_v43, %v1104_v19  ;;  %1263 = vrot.lane.b32.xlu0 %v2772_v33, %s2344_s25  ;;  %v3064_v19 = vperm.slane %v2471_v50, 3  ;;  %v2303_v24 = vld [vmem:[%s3038_s3 + $0x10] sm:$0xff] }
 0x15b   :  { %v1253_v5 = vadd.f32 %v1249_v9, %v1243_v2  ;;  %v1254_v25 = vadd.f32 %v1249_v9, %v1244_v3  ;;  %v3065_v2 = vperm.slane %v2574_v31, 0 }
 0x15d   :  { %v1257_v52 = vmax.f32 %v1253_v5, 0.0  ;;  %v1258_v28 = vmax.f32 %v1254_v25, 0.0 }
 0x160   :  { %1267 = vrot.lane.b32.xlu2 %v1258_v28, %s2344_s25  ;;  %1265 = vrot.lane.b32.xlu1 %v1257_v52, %s2344_s25 }
 0x161   :  { %1261 = vrot.lane.b32.xlu0 %v1255_v30, %s2344_s25 }
 0x168   :  { %1550 = vrot.lane.b32.xlu2 %v1255_v30, %s2346_s26  ;;  %1445 = vrot.lane.b32.xlu1 %v1255_v30, %s2345_s0 }
 0x169   :  { %1657 = vrot.lane.b32.xlu0 %v2772_v33, %s2347_s27 }
 0x170   :  { %1449 = vrot.lane.b32.xlu2 %v1257_v52, %s2345_s0  ;;  %1760 = vrot.lane.b32.xlu1 %v1255_v30, %s2348_s28 }
 0x171   :  { %1655 = vrot.lane.b32.xlu0 %v1255_v30, %s2347_s27 }
 0x178   :  { %1865 = vrot.lane.b32.xlu2 %v1255_v30, %s2349_s29  ;;  %1556 = vrot.lane.b32.xlu1 %v1258_v28, %s2346_s26 }
 0x179   :  { %1451 = vrot.lane.b32.xlu0 %v1258_v28, %s2345_s0 }
 0x180   :  { %1661 = vrot.lane.b32.xlu2 %v1258_v28, %s2347_s27  ;;  %1659 = vrot.lane.b32.xlu1 %v1257_v52, %s2347_s27 }
 0x181   :  { %1554 = vrot.lane.b32.xlu0 %v1257_v52, %s2346_s26 }
 0x188   :  { %1764 = vrot.lane.b32.xlu2 %v1257_v52, %s2348_s28  ;;  %1762 = vrot.lane.b32.xlu1 %v2772_v33, %s2348_s28 }
 0x189   :  { %1970 = vrot.lane.b32.xlu0 %v1255_v30, %s2350_s30 }
 0x190   :  { %1867 = vrot.lane.b32.xlu2 %v2772_v33, %s2349_s29  ;;  %1871 = vrot.lane.b32.xlu1 %v1258_v28, %s2349_s29 }
 0x191   :  { %1766 = vrot.lane.b32.xlu0 %v1258_v28, %s2348_s28 }
 0x198   :  { %1976 = vrot.lane.b32.xlu2 %v1258_v28, %s2350_s30  ;;  %1974 = vrot.lane.b32.xlu1 %v1257_v52, %s2350_s30 }
 0x199   :  { %1869 = vrot.lane.b32.xlu0 %v1257_v52, %s2349_s29 }
 0x1a0   :  { %2079 = vrot.lane.b32.xlu2 %v1257_v52, %s2351_s7  ;;  %2075 = vrot.lane.b32.xlu1 %v1255_v30, %s2351_s7 }
 0x1a1   :  { %1972 = vrot.lane.b32.xlu0 %v2772_v33, %s2350_s30 }
 0x1a8   :  { %2183 = vperm.xlu2 %2342, %v2180_v16   ;;  %2077 = vrot.lane.b32.xlu1 %v2772_v33, %s2351_s7  ;;  %v3067_v16 = vperm.slane %v2505_v0, 3 }
 0x1a9   :  { %2081 = vrot.lane.b32.xlu0 %v1258_v28, %s2351_s7 }
 0x1b2   :  { %v2817_v17 = vpop.permute.xlu2 %1552 }
 0x1ba   :  { %v1268_v21 = vpop.permute.xlu2 %1267 }
 0x1c2   :  { %v1551_v23 = vpop.permute.xlu2 %1550 }
 0x1c3   :  { %v1560_v14 = vsel %vm424_vm4, %v1551_v23, %v2817_v17 }
 0x1c4   :  { %v1563_v29 = vmul.f32 %v1560_v14, %v433_v10  ;;  %v2298_v10 = vld [vmem:[%s3038_s3 + $0x8] sm:$0xff] }
 0x1ca   :  { %v1448_v34 = vpop.permute.xlu1 %1447  ;;  %v1450_v36 = vpop.permute.xlu2 %1449 }
 0x1cb   :  { %v1264_v35 = vpop.permute.xlu0 %1263 }
 0x1d2   :  { %v1266_v37 = vpop.permute.xlu1 %1265  ;;  %v2851_v7 = vpop.permute.xlu2 %1865 }
 0x1d3   :  { %v1269_v38 = vsel %vm50_vm0, %v1266_v37, %v1268_v21  ;;  %v1270_v39 = vsel %vm50_vm0, %v1264_v35, %v1266_v37  ;;  %v1262_v40 = vpop.permute.xlu0 %1261  ;;  %v2308_v37 = vld [vmem:[%s3038_s3 + $0x18] sm:$0xff] }
 0x1d4   :  { %v1275_v41 = vmul.f32 %v1270_v39, %v59_v47  ;;  %v1276_v53 = vmul.f32 %v1269_v38, %v60_v48  ;;  %v1271_v55 = vsel %vm50_vm0, %v1262_v40, %v1264_v35  ;;  %v1272_v56 = vsel %vm50_vm0, %v1268_v21, %v1262_v40 }
 0x1d5   :  { %v1273_v11 = vmul.f32 %v1272_v56, %v57_v45  ;;  %v1274_v59 = vmul.f32 %v1271_v55, %v58_v46  ;;  %v1454_v47 = vsel %vm284_vm1, %v1448_v34, %v1450_v36  ;;  %v3069_v35 = vperm.slane %v2574_v31, 3 }
 0x1d6   :  { %1337 = vmatpush.msrb.mxu2 %v1275_v41  ;;  %1357 = vmatpush.msrb.mxu3 %v1276_v53  ;;  %v1459_v45 = vmul.f32 %v1454_v47, %v294_v58  ;;  %v3070_v40 = vperm.slane %v2618_v60, 0  ;;  %v3071_v53 = vperm.slane %v2618_v60, 1 }
 0x1d7   :  { %1297 = vmatpush.msrb.mxu0 %v1273_v11  ;;  %1317 = vmatpush.msrb.mxu1 %v1274_v59  ;;  %v2313_v11 = vld [vmem:[%s3038_s3 + $0x28] sm:$0xff]  ;;  %v3072_v59 = vperm.slane %v2628_v61, 0 }
 0x1d8   :  { %2291 = vmatmul.msk.f32.vlgmr.msrb.gmra.mxu1 %vm1278_vm10, %v1277_v13  ;;  %1420 = vmatpush.msra.mxu2 %v1257_v52 }
 0x1d9   :  { %1380 = vmatpush.msra.mxu0 %v1255_v30  ;;  %1400 = vmatpush.msra.mxu1 %v2772_v33  ;;  %v3063_v33 = vperm.slane %v2471_v50, 0 }
 0x1da   :  { %1440 = vmatpush.msra.mxu3 %v1258_v28  ;;  %2292 = vmatmul.msk.f32.vlgmr.msrb.gmra.mxu2 %vm1278_vm10, %v1277_v13  ;;  %v1446_v44 = vpop.permute.xlu1 %1445  ;;  %v1662_v26 = vpop.permute.xlu2 %1661  ;;  %v3066_v28 = vperm.slane %v2505_v0, 2 }
 0x1db   :  { %1521 = vmatpush.msrb.mxu2 %v1459_v45  ;;  %v1455_v46 = vsel %vm284_vm1, %v1446_v44, %v1448_v34  ;;  %v1658_v48 = vpop.permute.xlu0 %1657  ;;  %2293 = vmatmul.msk.f32.vlgmr.msrb.gmra.mxu3 %vm1278_vm10, %v1277_v13 }
 0x1dc   :  { %v1458_v58 = vmul.f32 %v1455_v46, %v293_v4  ;;  %2290 = vmatmul.msk.f32.vlgmr.msrb.gmra.mxu0 %vm1278_vm10, %v1277_v13 }
 0x1de   :  { %1501 = vmatpush.msrb.mxu1 %v1458_v58  ;;  %v3073_v58 = vperm.slane %v2618_v60, 2 }
 0x1e0   :  { %2295 = vmatmul.msk.f32.vlgmr.msra.gmra.mxu1 %vm1278_vm10, %v2289_v57 }
 0x1e1   :  { %1606 = vmatpush.msra.mxu1 %v1563_v29  ;;  %v3074_v29 = vperm.slane %v2618_v60, 3 }
 0x1e2   :  { %2296 = vmatmul.msk.f32.vlgmr.msra.gmra.mxu2 %vm1278_vm10, %v2289_v57  ;;  %v2863_v9 = vpop.permute.xlu1 %1760  ;;  %v1765_v43 = vpop.permute.xlu2 %1764 }
 0x1e3   :  { %v1656_v6 = vpop.permute.xlu0 %1655  ;;  %2297 = vmatmul.msk.f32.vlgmr.msra.gmra.mxu3 %vm1278_vm10, %v2289_v57 }
 0x1e4   :  { %v1665_v4 = vsel %vm564_vm5, %v1656_v6, %v1658_v48  ;;  %2294 = vmatmul.msk.f32.vlgmr.msra.gmra.mxu0 %vm1278_vm10, %v2289_v57  ;;  %v1666_v63 = vsel %vm564_vm5, %v1662_v26, %v1656_v6 }
 0x1e5   :  { %v1668_v12 = vmul.f32 %v1665_v4, %v573_v49  ;;  %v1667_v3 = vmul.f32 %v1666_v63, %v3065_v2  ;;  %v3078_v63 = vperm.slane %v2628_v61, 2  ;;  %v3080_v2 = vperm.slane %v2694_v51, 0 }
 0x1e8   :  { %2300 = vmatmul.msk.f32.vlgmr.msrb.gmra.mxu1 %vm1278_vm10, %v2298_v10 }
 0x1e9   :  { %1711 = vmatpush.msrb.mxu1 %v1668_v12 }
 0x1ea   :  { %2301 = vmatmul.msk.f32.vlgmr.msrb.gmra.mxu2 %vm1278_vm10, %v2298_v10  ;;  %v1557_v15 = vpop.permute.xlu1 %1556  ;;  %v1868_v0 = vpop.permute.xlu2 %1867 }
 0x1eb   :  { %v1561_v27 = vsel %vm424_vm4, %v1557_v15, %v1551_v23  ;;  %v1452_v54 = vpop.permute.xlu0 %1451  ;;  %v3068_v23 = vperm.slane %v2574_v31, 2  ;;  %v1875_v56 = vsel %vm844_vm7, %v2851_v7, %v1868_v0 }
 0x1ec   :  { %v1453_v8 = vsel %vm284_vm1, %v1450_v36, %v1452_v54  ;;  %v1456_v49 = vsel %vm284_vm1, %v1452_v54, %v1446_v44  ;;  %v1562_v1 = vmul.f32 %v1561_v27, %v432_v20  ;;  %v1877_v13 = vmul.f32 %v1875_v56, %v3072_v59 }
 0x1ed   :  { %v1457_v18 = vmul.f32 %v1456_v49, %v3063_v33  ;;  %v1460_v32 = vmul.f32 %v1453_v8, %v3064_v19  ;;  %v3077_v8 = vperm.slane %v2628_v61, 1  ;;  %v2318_v33 = vld [vmem:[%s3038_s3 + $0x30] sm:$0xff] }
 0x1ef   :  { %1481 = vmatpush.msrb.mxu0 %v1457_v18  ;;  %1541 = vmatpush.msrb.mxu3 %v1460_v32  ;;  %v3079_v18 = vperm.slane %v2694_v51, 2 }
 0x1f0   :  { %2299 = vmatmul.msk.f32.vlgmr.msrb.gmra.mxu0 %vm1278_vm10, %v2298_v10  ;;  %2302 = vmatmul.msk.f32.vlgmr.msrb.gmra.mxu3 %vm1278_vm10, %v2298_v10 }
 0x1f1   :  { %1586 = vmatpush.msra.mxu0 %v1562_v1  ;;  %2305 = vmatmul.msk.f32.vlgmr.msra.gmra.mxu1 %vm1278_vm10, %v2303_v24 }
 0x1f2   :  { %v1660_v50 = vpop.permute.xlu1 %1659  ;;  %v1977_v14 = vpop.permute.xlu2 %1976 }
 0x1f3   :  { %1691 = vmatpush.msrb.mxu0 %v1667_v3  ;;  %v1663_v20 = vsel %vm564_vm5, %v1660_v50, %v1662_v26  ;;  %v1664_v62 = vsel %vm564_vm5, %v1658_v48, %v1660_v50  ;;  %v1555_v5 = vpop.permute.xlu0 %1554  ;;  %v3081_v50 = vperm.slane %v2694_v51, 1 }
 0x1f4   :  { %v1558_v25 = vsel %vm424_vm4, %v1555_v5, %v1557_v15  ;;  %v1559_v52 = vsel %vm424_vm4, %v2817_v17, %v1555_v5  ;;  %v1669_v34 = vmul.f32 %v1664_v62, %v3068_v23  ;;  %v1670_v36 = vmul.f32 %v1663_v20, %v3069_v35  ;;  %v2323_v62 = vld [vmem:[%s3038_s3 + $0x38] sm:$0xff] }
 0x1f5   :  { %v1564_v30 = vmul.f32 %v1559_v52, %v3066_v28  ;;  %v1565_v21 = vmul.f32 %v1558_v25, %v3067_v16 }
 0x1f7   :  { %1626 = vmatpush.msra.mxu2 %v1564_v30  ;;  %1646 = vmatpush.msra.mxu3 %v1565_v21  ;;  %v3082_v30 = vperm.slane %v2734_v22, 0  ;;  %v3083_v21 = vperm.slane %v2734_v22, 1 }
 0x1f8   :  { %2304 = vmatmul.msk.f32.vlgmr.msra.gmra.mxu0 %vm1278_vm10, %v2303_v24  ;;  %2306 = vmatmul.msk.f32.vlgmr.msra.gmra.mxu2 %vm1278_vm10, %v2303_v24 }
 0x1f9   :  { %2307 = vmatmul.msk.f32.vlgmr.msra.gmra.mxu3 %vm1278_vm10, %v2303_v24  ;;  %2310 = vmatmul.msk.f32.vlgmr.msrb.gmra.mxu1 %vm1278_vm10, %v2308_v37 }
 0x1fa   :  { %1731 = vmatpush.msrb.mxu2 %v1669_v34  ;;  %1751 = vmatpush.msrb.mxu3 %v1670_v36  ;;  %v1763_v17 = vpop.permute.xlu1 %1762  ;;  %v2080_v5 = vpop.permute.xlu2 %2079  ;;  %v3084_v36 = vperm.slane %v2734_v22, 2 }
 0x1fb   :  { %v1769_v31 = vsel %vm704_vm6, %v1763_v17, %v1765_v43  ;;  %v1770_v38 = vsel %vm704_vm6, %v2863_v9, %v1763_v17  ;;  %v1971_v39 = vpop.permute.xlu0 %1970 }
 0x1fc   :  { %v1772_v41 = vmul.f32 %v1770_v38, %v3070_v40  ;;  %v1773_v55 = vmul.f32 %v1769_v31, %v3071_v53  ;;  %v1981_v4 = vsel %vm984_vm8, %v1977_v14, %v1971_v39  ;;  %v2328_v31 = vld [vmem:[%s3038_s3 + $0x40] sm:$0xff] }
 0x1fe   :  { %1796 = vmatpush.msra.mxu0 %v1772_v41  ;;  %1816 = vmatpush.msra.mxu1 %v1773_v55 }
 0x200   :  { %2309 = vmatmul.msk.f32.vlgmr.msrb.gmra.mxu0 %vm1278_vm10, %v2308_v37  ;;  %2311 = vmatmul.msk.f32.vlgmr.msrb.gmra.mxu2 %vm1278_vm10, %v2308_v37 }
 0x201   :  { %2312 = vmatmul.msk.f32.vlgmr.msrb.gmra.mxu3 %vm1278_vm10, %v2308_v37  ;;  %2315 = vmatmul.msk.f32.vlgmr.msra.gmra.mxu1 %vm1278_vm10, %v2313_v11 }
 0x202   :  { %1901 = vmatpush.msrb.mxu0 %v1877_v13  ;;  %v1872_v47 = vpop.permute.xlu1 %1871 }
 0x203   :  { %v1876_v45 = vsel %vm844_vm7, %v1872_v47, %v2851_v7  ;;  %v1767_v44 = vpop.permute.xlu0 %1766  ;;  %v3075_v7 = vperm.slane %v2628_v61, 3 }
 0x204   :  { %v1768_v46 = vsel %vm704_vm6, %v1765_v43, %v1767_v44  ;;  %v1771_v48 = vsel %vm704_vm6, %v1767_v44, %v2863_v9  ;;  %v3076_v9 = vperm.slane %v2694_v51, 3 }
 0x205   :  { %v1774_v57 = vmul.f32 %v1768_v46, %v3073_v58  ;;  %v1775_v6 = vmul.f32 %v1771_v48, %v3074_v29  ;;  %v1880_v12 = vmul.f32 %v1876_v45, %v3075_v7 }
 0x206   :  { %v1985_v10 = vmul.f32 %v1981_v4, %v3076_v9 }
 0x207   :  { %1836 = vmatpush.msra.mxu2 %v1774_v57  ;;  %1856 = vmatpush.msra.mxu3 %v1775_v6 }
 0x208   :  { %2314 = vmatmul.msk.f32.vlgmr.msra.gmra.mxu0 %vm1278_vm10, %v2313_v11  ;;  %2316 = vmatmul.msk.f32.vlgmr.msra.gmra.mxu2 %vm1278_vm10, %v2313_v11 }
 0x209   :  { %2317 = vmatmul.msk.f32.vlgmr.msra.gmra.mxu3 %vm1278_vm10, %v2313_v11 }
 0x20a   :  { %1961 = vmatpush.msrb.mxu3 %v1880_v12  ;;  %v1975_v60 = vpop.permute.xlu1 %1974 }
 0x20b   :  { %v1978_v26 = vsel %vm984_vm8, %v1975_v60, %v1977_v14  ;;  %v1870_v15 = vpop.permute.xlu0 %1869 }
 0x20c   :  { %2066 = vmatpush.msra.mxu3 %v1985_v10  ;;  %v1873_v27 = vsel %vm844_vm7, %v1870_v15, %v1872_v47  ;;  %v1874_v54 = vsel %vm844_vm7, %v1868_v0, %v1870_v15  ;;  %v1984_v19 = vmul.f32 %v1978_v26, %v3079_v18  ;;  %v3085_v0 = vperm.slane %v2734_v22, 3 }
 0x20d   :  { %v1878_v49 = vmul.f32 %v1874_v54, %v3077_v8  ;;  %v1879_v1 = vmul.f32 %v1873_v27, %v3078_v63 }
 0x20f   :  { %1921 = vmatpush.msrb.mxu1 %v1878_v49  ;;  %1941 = vmatpush.msrb.mxu2 %v1879_v1 }
 0x210   :  { %2319 = vmatmul.msk.f32.vlgmr.msrb.gmra.mxu0 %vm1278_vm10, %v2318_v33  ;;  %2320 = vmatmul.msk.f32.vlgmr.msrb.gmra.mxu1 %vm1278_vm10, %v2318_v33 }
 0x211   :  { %2321 = vmatmul.msk.f32.vlgmr.msrb.gmra.mxu2 %vm1278_vm10, %v2318_v33  ;;  %2322 = vmatmul.msk.f32.vlgmr.msrb.gmra.mxu3 %vm1278_vm10, %v2318_v33 }
 0x212   :  { %2046 = vmatpush.msra.mxu2 %v1984_v19  ;;  %v2076_v61 = vpop.permute.xlu1 %2075 }
 0x213   :  { %v1973_v32 = vpop.permute.xlu0 %1972 }
 0x214   :  { %v1979_v24 = vsel %vm984_vm8, %v1973_v32, %v1975_v60  ;;  %v1980_v43 = vsel %vm984_vm8, %v1971_v39, %v1973_v32 }
 0x215   :  { %v1982_v3 = vmul.f32 %v1980_v43, %v3080_v2  ;;  %v1983_v20 = vmul.f32 %v1979_v24, %v3081_v50 }
 0x217   :  { %2006 = vmatpush.msra.mxu0 %v1982_v3  ;;  %2026 = vmatpush.msra.mxu1 %v1983_v20 }
 0x218   :  { %2324 = vmatmul.msk.f32.vlgmr.msra.gmra.mxu0 %vm1278_vm10, %v2323_v62  ;;  %2325 = vmatmul.msk.f32.vlgmr.msra.gmra.mxu1 %vm1278_vm10, %v2323_v62 }
 0x219   :  { %2326 = vmatmul.msk.f32.vlgmr.msra.gmra.mxu2 %vm1278_vm10, %v2323_v62  ;;  %2327 = vmatmul.msk.f32.vlgmr.msra.gmra.mxu3 %vm1278_vm10, %v2323_v62 }
 0x21a   :  { %v2078_v25 = vpop.permute.xlu1 %2077 }
 0x21b   :  { %v2084_v51 = vsel %vm1124_vm9, %v2078_v25, %v2080_v5  ;;  %v2085_v52 = vsel %vm1124_vm9, %v2076_v61, %v2078_v25  ;;  %v2082_v28 = vpop.permute.xlu0 %2081 }
 0x21c   :  { %v2087_v16 = vmul.f32 %v2085_v52, %v3082_v30  ;;  %v2088_v23 = vmul.f32 %v2084_v51, %v3083_v21  ;;  %v2083_v34 = vsel %vm1124_vm9, %v2080_v5, %v2082_v28  ;;  %v2086_v35 = vsel %vm1124_vm9, %v2082_v28, %v2076_v61 }
 0x21d   :  { %v2089_v37 = vmul.f32 %v2083_v34, %v3084_v36  ;;  %v2090_v17 = vmul.f32 %v2086_v35, %v3085_v0  ;;  %v2184_v35 = vpop.permute.xlu2 %2183 }
 0x21e   :  { %2111 = vmatpush.msrb.mxu0 %v2087_v16  ;;  %2131 = vmatpush.msrb.mxu1 %v2088_v23 }
 0x21f   :  { %2151 = vmatpush.msrb.mxu2 %v2089_v37  ;;  %2171 = vmatpush.msrb.mxu3 %v2090_v17 }
 0x220   :  { %2329 = vmatmul.msk.f32.vlgmr.msrb.gmra.mxu0 %vm1278_vm10, %v2328_v31  ;;  %2330 = vmatmul.msk.f32.vlgmr.msrb.gmra.mxu1 %vm1278_vm10, %v2328_v31 }
 0x221   :  { %2331 = vmatmul.msk.f32.vlgmr.msrb.gmra.mxu2 %vm1278_vm10, %v2328_v31  ;;  %2332 = vmatmul.msk.f32.vlgmr.msrb.gmra.mxu3 %vm1278_vm10, %v2328_v31 }
 0x255   :  { %v1319_v42 = vpop.f32.mrf.mxu1 }
 0x259   :  { %v1299_v38 = vpop.f32.mrf.mxu0 }
 0x25d   :  { %v1402_v22 = vpop.f32.mrf.mxu1  ;;  %v1339_v39 = vpop.f32.mrf.mxu2 }
 0x25e   :  { %v1359_v40 = vpop.f32.mrf.mxu3  ;;  %v1403_v10 = vadd.f32 %v1402_v22, %v1319_v42 }
 0x261   :  { %v1382_v41 = vpop.f32.mrf.mxu0 }
 0x262   :  { %v1383_v60 = vadd.f32 %v1382_v41, %v1299_v38 }
 0x265   :  { %v1503_v53 = vpop.f32.mrf.mxu1  ;;  %v1422_v55 = vpop.f32.mrf.mxu2 }
 0x266   :  { %v1442_v56 = vpop.f32.mrf.mxu3  ;;  %v1547_v26 = vadd.f32 %v1503_v53, %v1403_v10  ;;  %v1423_v19 = vadd.f32 %v1422_v55, %v1339_v39 }
 0x267   :  { %v1443_v61 = vadd.f32 %v1442_v56, %v1359_v40 }
 0x26d   :  { %v1483_v11 = vpop.f32.mrf.mxu0  ;;  %v1523_v13 = vpop.f32.mrf.mxu2 }
 0x26e   :  { %v1608_v59 = vpop.f32.mrf.mxu1  ;;  %v1546_v15 = vadd.f32 %v1483_v11, %v1383_v60  ;;  %v1548_v43 = vadd.f32 %v1523_v13, %v1423_v19 }
 0x26f   :  { %v1652_v27 = vadd.f32 %v1608_v59, %v1547_v26 }
 0x273   :  { %v1543_v47 = vpop.f32.mrf.mxu3 }
 0x274   :  { %v1549_v2 = vadd.f32 %v1543_v47, %v1443_v61 }
 0x275   :  { %v1588_v45 = vpop.f32.mrf.mxu0 }
 0x276   :  { %v1713_v44 = vpop.f32.mrf.mxu1  ;;  %v1651_v54 = vadd.f32 %v1588_v45, %v1546_v15 }
 0x277   :  { %v1757_v33 = vadd.f32 %v1713_v44, %v1652_v27 }
 0x27b   :  { %v1628_v46 = vpop.f32.mrf.mxu2 }
 0x27c   :  { %v1648_v48 = vpop.f32.mrf.mxu3  ;;  %v1653_v20 = vadd.f32 %v1628_v46, %v1548_v43 }
 0x27d   :  { %v1693_v14 = vpop.f32.mrf.mxu0  ;;  %v1654_v62 = vadd.f32 %v1648_v48, %v1549_v2 }
 0x27e   :  { %v1818_v29 = vpop.f32.mrf.mxu1  ;;  %v1756_v18 = vadd.f32 %v1693_v14, %v1651_v54 }
 0x27f   :  { %v1862_v32 = vadd.f32 %v1818_v29, %v1757_v33 }
 0x283   :  { %v1733_v58 = vpop.f32.mrf.mxu2 }
 0x284   :  { %v1753_v57 = vpop.f32.mrf.mxu3  ;;  %v1758_v28 = vadd.f32 %v1733_v58, %v1653_v20 }
 0x285   :  { %v1798_v6 = vpop.f32.mrf.mxu0  ;;  %v1759_v30 = vadd.f32 %v1753_v57, %v1654_v62 }
 0x286   :  { %v1861_v24 = vadd.f32 %v1798_v6, %v1756_v18 }
 0x28b   :  { %v1838_v4 = vpop.f32.mrf.mxu2 }
 0x28c   :  { %v1858_v7 = vpop.f32.mrf.mxu3  ;;  %v1863_v36 = vadd.f32 %v1838_v4, %v1758_v28 }
 0x28d   :  { %v1903_v12 = vpop.f32.mrf.mxu0  ;;  %v1923_v9 = vpop.f32.mrf.mxu1  ;;  %v1864_v37 = vadd.f32 %v1858_v7, %v1759_v30 }
 0x28e   :  { %v1966_v3 = vadd.f32 %v1903_v12, %v1861_v24  ;;  %v1967_v50 = vadd.f32 %v1923_v9, %v1862_v32 }
 0x294   :  { %v1943_v8 = vpop.f32.mrf.mxu2  ;;  %v1963_v49 = vpop.f32.mrf.mxu3 }
 0x295   :  { %v2008_v63 = vpop.f32.mrf.mxu0  ;;  %v2028_v1 = vpop.f32.mrf.mxu1  ;;  %v1968_v31 = vadd.f32 %v1943_v8, %v1863_v36  ;;  %v1969_v42 = vadd.f32 %v1963_v49, %v1864_v37 }
 0x296   :  { %v2071_v5 = vadd.f32 %v2008_v63, %v1966_v3  ;;  %v2072_v25 = vadd.f32 %v2028_v1, %v1967_v50 }
 0x29c   :  { %v2048_v51 = vpop.f32.mrf.mxu2  ;;  %v2068_v52 = vpop.f32.mrf.mxu3 }
 0x29d   :  { %v2113_v16 = vpop.f32.mrf.mxu0  ;;  %v2133_v21 = vpop.f32.mrf.mxu1  ;;  %v2073_v39 = vadd.f32 %v2048_v51, %v1968_v31  ;;  %v2074_v40 = vadd.f32 %v2068_v52, %v1969_v42 }
 0x29e   :  { %v2176_v23 = vadd.f32 %v2113_v16, %v2071_v5  ;;  %v2177_v34 = vadd.f32 %v2133_v21, %v2072_v25 }
 0x2a0   :  { %v2186_v0 = vadd.f32 %v2184_v35, %v2176_v23  ;;  %v2187_v17 = vadd.f32 %v2184_v35, %v2177_v34 }
 0x2a2   :  { %v2190_v38 = vmax.f32 %v2186_v0, 0.0  ;;  %v2191_v22 = vmax.f32 %v2187_v17, 0.0 }
 0x2a4   :  { %2194 = vst [vmem:[%s3039_s6] sm:$0xff] %v2190_v38  ;;  %v2153_v41 = vpop.f32.mrf.mxu2  ;;  %v2173_v53 = vpop.f32.mrf.mxu3 }
 0x2a5   :  { %2195 = vst [vmem:[%s3039_s6 + $0x8] sm:$0xff] %v2191_v22  ;;  %v2178_v55 = vadd.f32 %v2153_v41, %v2073_v39  ;;  %v2179_v56 = vadd.f32 %v2173_v53, %v2074_v40 }
 0x2a7   :  { %v2188_v11 = vadd.f32 %v2184_v35, %v2178_v55  ;;  %v2189_v59 = vadd.f32 %v2184_v35, %v2179_v56 }
 0x2a9   :  { %v2192_v13 = vmax.f32 %v2188_v11, 0.0  ;;  %v2193_v47 = vmax.f32 %v2189_v59, 0.0 }
 0x2ab   :  { %2196 = vst [vmem:[%s3039_s6 + $0x10] sm:$0xff] %v2192_v13 }
 0x2ac   :  { %2197 = vst [vmem:[%s3039_s6 + $0x18] sm:$0xff] %v2193_v47 }

</bundles_post_ra>
